<compile_context>
chip_gen: v6e
topology: v6e:2x2x1
jax: 0.10.0
libtpu: 0.0.40
codegen_flags: <defaults>
</compile_context>

<pallas_src>
import jax
import jax.numpy as jnp
from jax.experimental import pallas as pl
from jax.experimental.pallas import tpu as pltpu

INPUT_SHAPE = 87
FC1_DIMS = 1024
FC2_DIMS = 512
LOG_STD_MIN = -20.0
LOG_STD_MAX = 2.0
LANE = 128
BF16_SUBLANE = 16  # bf16 packs two rows per sublane -> batch tiles in multiples of 16
IN_PAD = 128       # INPUT_SHAPE (87) padded to one clean K=128 MXU pass


def _round_up(x, m):
    return ((x + m - 1) // m) * m


def _actor_kernel(x_ref, w1_ref, b1_ref, w2_ref, b2_ref, w3_ref, b3_ref, mu_ref):
    # fc1: bf16 x bf16 -> f32 accumulation, + bias, relu
    h1 = jnp.dot(x_ref[...], w1_ref[...], preferred_element_type=jnp.float32)
    h1 = jnp.maximum(h1 + b1_ref[...], 0.0)
    # fc2: bf16 x bf16 -> f32 accumulation, + bias, relu
    h2 = jnp.dot(h1.astype(jnp.bfloat16), w2_ref[...],
                 preferred_element_type=jnp.float32)
    h2 = jnp.maximum(h2 + b2_ref[...], 0.0)
    # fc3: bf16 x bf16 -> f32 accumulation (native MXU path on v6e/v7x), + bias, tanh
    h3 = jnp.dot(h2.astype(jnp.bfloat16), w3_ref[...],
                 preferred_element_type=jnp.float32) + b3_ref[...]
    mu_ref[...] = jnp.tanh(h3).astype(mu_ref.dtype)  # bf16 writeback (lane-dense)


def prepare_params(params):
    """One-time (per-parameter-update) preparation of kernel-ready operands.

    Hoists the bf16 casts, zero-padding and the x-independent std computation out of
    the per-call forward path (these were previously 2-3x the kernel's own weight DMA).
    """
    w1, b1, w2, b2, w3, b3, log_std = params
    A = w3.shape[1]
    A_pad = max(LANE, _round_up(A, LANE))

    # fc1 weights: pad in_dim 87 -> 128 with zero rows, cast to bf16.
    w1p = jnp.zeros((IN_PAD, FC1_DIMS), jnp.float32).at[:INPUT_SHAPE].set(w1)
    w1p = w1p.astype(jnp.bfloat16)
    w2b = w2.astype(jnp.bfloat16)
    # fc3 weights/bias: pad action dim to a full 128-lane tile, cast weights to bf16.
    w3p = jnp.zeros((FC2_DIMS, A_pad), jnp.float32).at[:, :A].set(w3)
    w3p = w3p.astype(jnp.bfloat16)
    b3p = jnp.zeros((1, A_pad), jnp.float32).at[:, :A].set(b3)

    # std is independent of x: clip -> exp once here, broadcast in the wrapper.
    std_row = jnp.exp(jnp.clip(log_std, LOG_STD_MIN, LOG_STD_MAX))

    return {
        "w1": w1p, "b1": b1, "w2": w2b, "b2": b2, "w3": w3p, "b3": b3p,
        "std_row": std_row, "action_space": A, "a_pad": A_pad,
    }


def actor_forward(x, prepared, *, block_b=256):
    """Returns (mu, std) -- the parameters of the Normal policy distribution."""
    B = x.shape[0]
    A = prepared["action_space"]
    A_pad = prepared["a_pad"]

    # Batch tile: multiple of 16 (bf16 sublane packing), default 256 to fill the MXU.
    block_b = max(BF16_SUBLANE, (block_b // BF16_SUBLANE) * BF16_SUBLANE)
    Bt = min(block_b, _round_up(B, BF16_SUBLANE))
    B_pad = _round_up(B, Bt)
    n_tiles = B_pad // Bt

    # Per-call activation prep only: pad batch + in_dim, cast to bf16 (cheap, ~B*128*2 B).
    xp = jnp.zeros((B_pad, IN_PAD), jnp.bfloat16)
    xp = xp.at[:B, :INPUT_SHAPE].set(x.astype(jnp.bfloat16))

    w1, b1, w2, b2, w3, b3 = (prepared["w1"], prepared["b1"], prepared["w2"],
                              prepared["b2"], prepared["w3"], prepared["b3"])

    flops = 2 * B_pad * (IN_PAD * FC1_DIMS + FC1_DIMS * FC2_DIMS + FC2_DIMS * A_pad)
    bytes_accessed = (w1.size * 2 + w2.size * 2 + w3.size * 2
                      + b1.size * 4 + b2.size * 4 + b3.size * 4
                      + xp.size * 2 + B_pad * A_pad * 2)

    # Megacore: only shard the batch grid across TensorCores when there are >= 2 tiles,
    # otherwise a tiny batch would just duplicate the dominant weight DMA (v7x).
    dim_sem = ("parallel",) if n_tiles >= 2 else ("arbitrary",)

    mu_pad = pl.pallas_call(
        _actor_kernel,
        out_shape=jax.ShapeDtypeStruct((B_pad, A_pad), jnp.bfloat16),
        grid=(n_tiles,),
        in_specs=[
            pl.BlockSpec((Bt, IN_PAD), lambda i: (i, 0)),           # x: batch-tiled
            pl.BlockSpec((IN_PAD, FC1_DIMS), lambda i: (0, 0)),     # w1: VMEM-resident
            pl.BlockSpec((1, FC1_DIMS), lambda i: (0, 0)),          # b1
            pl.BlockSpec((FC1_DIMS, FC2_DIMS), lambda i: (0, 0)),   # w2
            pl.BlockSpec((1, FC2_DIMS), lambda i: (0, 0)),          # b2
            pl.BlockSpec((FC2_DIMS, A_pad), lambda i: (0, 0)),      # w3 (padded, bf16)
            pl.BlockSpec((1, A_pad), lambda i: (0, 0)),             # b3 (padded)
        ],
        out_specs=pl.BlockSpec((Bt, A_pad), lambda i: (i, 0)),
        compiler_params=pltpu.CompilerParams(
            dimension_semantics=dim_sem,
            vmem_limit_bytes=16 * 1024 * 1024),
        cost_estimate=pl.CostEstimate(
            flops=flops,
            transcendentals=B_pad * A_pad,
            bytes_accessed=bytes_accessed),
    )(xp, w1, b1, w2, b2, w3, b3)

    mu = mu_pad[:B, :A].astype(jnp.float32)
    std = jnp.broadcast_to(prepared["std_row"], mu.shape)
    return mu, std


def init_params(key, input_shape, action_space):
    """Deterministic init mirroring PyTorch nn.Linear default (uniform +-1/sqrt(fan_in))."""
    def linear(key, fan_in, fan_out):
        kw, kb = jax.random.split(key)
        bound = 1.0 / jnp.sqrt(jnp.float32(fan_in))
        # stored as (in, out) so the kernel does x @ W
        w = jax.random.uniform(kw, (fan_in, fan_out), jnp.float32, -bound, bound)
        b = jax.random.uniform(kb, (1, fan_out), jnp.float32, -bound, bound)
        return w, b

    k1, k2, k3 = jax.random.split(key, 3)
    w1, b1 = linear(k1, input_shape, FC1_DIMS)
    w2, b2 = linear(k2, FC1_DIMS, FC2_DIMS)
    w3, b3 = linear(k3, FC2_DIMS, action_space)
    log_std = jnp.ones((1, action_space), jnp.float32) * 0.01
    return (w1, b1, w2, b2, w3, b3, log_std)


def reference_forward(x, params):
    w1, b1, w2, b2, w3, b3, log_std = params
    h = jax.nn.relu(x @ w1 + b1)
    h = jax.nn.relu(h @ w2 + b2)
    mu = jnp.tanh(h @ w3 + b3)
    std = jnp.broadcast_to(
        jnp.exp(jnp.clip(log_std, LOG_STD_MIN, LOG_STD_MAX)), mu.shape)
    return mu, std


if __name__ == "__main__":
    key = jax.random.PRNGKey(0)
    k_params, k_x = jax.random.split(key)

    batch = 8            # small example batch
    action_space = 8     # small example action dimension

    params = init_params(k_params, INPUT_SHAPE, action_space)
    prepared = prepare_params(params)        # hoisted, once per parameter update
    x = jax.random.normal(k_x, (batch, INPUT_SHAPE), jnp.float32)

    mu, std = actor_forward(x, prepared)
    jax.block_until_ready((mu, std))

    mu_ref, std_ref = reference_forward(x, params)
    assert mu.shape == (batch, action_space) and std.shape == (batch, action_space)
    # fc1/fc2/fc3 run with bf16 MXU operands and a bf16 output tile -> relaxed tolerance
    # vs the pure-f32 reference (tanh output in [-1,1]).
    assert jnp.allclose(mu, mu_ref, atol=3e-2, rtol=3e-2)
    # std path is exact f32 (computed once in prepare_params).
    assert jnp.allclose(std, std_ref, atol=1e-6, rtol=1e-6)

    # TODO(synk): torch.distributions.Normal object itself (sampling / log_prob) is
    # not part of the forward hot path; only its (mu, std) parameters are produced.
    print("KERNEL_OK")
</pallas_src>

<mosaic_0001>
module attributes {stable_mosaic.version = 11 : i64} {
  func.func @_actor_kernel(%arg0: i32, %arg1: memref<16x128xbf16, #tpu.memory_space<vmem>>, %arg2: memref<128x1024xbf16, #tpu.memory_space<vmem>>, %arg3: memref<1x1024xf32, #tpu.memory_space<vmem>>, %arg4: memref<1024x512xbf16, #tpu.memory_space<vmem>>, %arg5: memref<1x512xf32, #tpu.memory_space<vmem>>, %arg6: memref<512x128xbf16, #tpu.memory_space<vmem>>, %arg7: memref<1x128xf32, #tpu.memory_space<vmem>>, %arg8: memref<16x128xbf16, #tpu.memory_space<vmem>>) attributes {dimension_semantics = [#tpu.dimension_semantics<arbitrary>], iteration_bounds = array<i64: 1>, scalar_prefetch = 0 : i64, scratch_operands = 0 : i64, tpu.core_type = #tpu.core_type<tc>, window_params = [{transform_indices = @transform_0, window_bounds = array<i64: 16, 128>}, {pipeline_mode = #tpu.pipeline_mode<synchronous>, transform_indices = @transform_1, window_bounds = array<i64: 128, 1024>}, {pipeline_mode = #tpu.pipeline_mode<synchronous>, transform_indices = @transform_2, window_bounds = array<i64: 1, 1024>}, {pipeline_mode = #tpu.pipeline_mode<synchronous>, transform_indices = @transform_3, window_bounds = array<i64: 1024, 512>}, {pipeline_mode = #tpu.pipeline_mode<synchronous>, transform_indices = @transform_4, window_bounds = array<i64: 1, 512>}, {pipeline_mode = #tpu.pipeline_mode<synchronous>, transform_indices = @transform_5, window_bounds = array<i64: 512, 128>}, {pipeline_mode = #tpu.pipeline_mode<synchronous>, transform_indices = @transform_6, window_bounds = array<i64: 1, 128>}, {transform_indices = @transform_7, window_bounds = array<i64: 16, 128>}]} {
    %c0 = arith.constant 0 : index
    %c0_0 = arith.constant 0 : index
    %0 = vector.load %arg1[%c0, %c0_0] : memref<16x128xbf16, #tpu.memory_space<vmem>>, vector<16x128xbf16>
    %c0_1 = arith.constant 0 : index
    %c0_2 = arith.constant 0 : index
    %1 = vector.load %arg2[%c0_1, %c0_2] : memref<128x1024xbf16, #tpu.memory_space<vmem>>, vector<128x1024xbf16>
    %cst = arith.constant dense<0.000000e+00> : vector<16x1024xf32>
    %2 = tpu.matmul %0, %1, %cst {dimension_numbers = #tpu.dot_dimension_numbers<[1], [0], [0], [1], [0, 0, 1, 1], [], []>} : vector<16x128xbf16>, vector<128x1024xbf16>, vector<16x1024xf32> -> vector<16x1024xf32>
    %c0_3 = arith.constant 0 : index
    %c0_4 = arith.constant 0 : index
    %3 = vector.load %arg3[%c0_3, %c0_4] : memref<1x1024xf32, #tpu.memory_space<vmem>>, vector<1x1024xf32>
    %4 = vector.broadcast %3 : vector<1x1024xf32> to vector<16x1024xf32>
    %5 = arith.addf %2, %4 : vector<16x1024xf32>
    %cst_5 = arith.constant 0.000000e+00 : f32
    %6 = vector.broadcast %cst_5 : f32 to vector<16x1024xf32>
    %7 = arith.maximumf %5, %6 : vector<16x1024xf32>
    %8 = arith.truncf %7 : vector<16x1024xf32> to vector<16x1024xbf16>
    %c0_6 = arith.constant 0 : index
    %c0_7 = arith.constant 0 : index
    %9 = vector.load %arg4[%c0_6, %c0_7] : memref<1024x512xbf16, #tpu.memory_space<vmem>>, vector<1024x512xbf16>
    %cst_8 = arith.constant dense<0.000000e+00> : vector<16x512xf32>
    %10 = tpu.matmul %8, %9, %cst_8 {dimension_numbers = #tpu.dot_dimension_numbers<[1], [0], [0], [1], [0, 0, 1, 1], [], []>} : vector<16x1024xbf16>, vector<1024x512xbf16>, vector<16x512xf32> -> vector<16x512xf32>
    %c0_9 = arith.constant 0 : index
    %c0_10 = arith.constant 0 : index
    %11 = vector.load %arg5[%c0_9, %c0_10] : memref<1x512xf32, #tpu.memory_space<vmem>>, vector<1x512xf32>
    %12 = vector.broadcast %11 : vector<1x512xf32> to vector<16x512xf32>
    %13 = arith.addf %10, %12 : vector<16x512xf32>
    %cst_11 = arith.constant 0.000000e+00 : f32
    %14 = vector.broadcast %cst_11 : f32 to vector<16x512xf32>
    %15 = arith.maximumf %13, %14 : vector<16x512xf32>
    %16 = arith.truncf %15 : vector<16x512xf32> to vector<16x512xbf16>
    %c0_12 = arith.constant 0 : index
    %c0_13 = arith.constant 0 : index
    %17 = vector.load %arg6[%c0_12, %c0_13] : memref<512x128xbf16, #tpu.memory_space<vmem>>, vector<512x128xbf16>
    %cst_14 = arith.constant dense<0.000000e+00> : vector<16x128xf32>
    %18 = tpu.matmul %16, %17, %cst_14 {dimension_numbers = #tpu.dot_dimension_numbers<[1], [0], [0], [1], [0, 0, 1, 1], [], []>} : vector<16x512xbf16>, vector<512x128xbf16>, vector<16x128xf32> -> vector<16x128xf32>
    %c0_15 = arith.constant 0 : index
    %c0_16 = arith.constant 0 : index
    %19 = vector.load %arg7[%c0_15, %c0_16] : memref<1x128xf32, #tpu.memory_space<vmem>>, vector<1x128xf32>
    %20 = vector.broadcast %19 : vector<1x128xf32> to vector<16x128xf32>
    %21 = arith.addf %18, %20 : vector<16x128xf32>
    %22 = math.tanh %21 : vector<16x128xf32>
    %23 = arith.truncf %22 : vector<16x128xf32> to vector<16x128xbf16>
    %c0_17 = arith.constant 0 : index
    %c0_18 = arith.constant 0 : index
    %24 = vector.load %arg8[%c0_17, %c0_18] : memref<16x128xbf16, #tpu.memory_space<vmem>>, vector<16x128xbf16>
    tpu.vector_store %arg8[%c0_17, %c0_18], %23 {strides = array<i32>} : memref<16x128xbf16, #tpu.memory_space<vmem>>, vector<16x128xbf16>,
    return
  }
  func.func @transform_0(%arg0: i32) -> (i32, i32) {
    %c0_i32 = arith.constant 0 : i32
    %c0_i32_0 = arith.constant 0 : i32
    return %arg0, %c0_i32 : i32, i32
  }
  func.func @transform_1(%arg0: i32) -> (i32, i32) {
    %c0_i32 = arith.constant 0 : i32
    %c0_i32_0 = arith.constant 0 : i32
    %c0_i32_1 = arith.constant 0 : i32
    return %c0_i32, %c0_i32_0 : i32, i32
  }
  func.func @transform_2(%arg0: i32) -> (i32, i32) {
    %c0_i32 = arith.constant 0 : i32
    %c0_i32_0 = arith.constant 0 : i32
    %c0_i32_1 = arith.constant 0 : i32
    return %c0_i32, %c0_i32_0 : i32, i32
  }
  func.func @transform_3(%arg0: i32) -> (i32, i32) {
    %c0_i32 = arith.constant 0 : i32
    %c0_i32_0 = arith.constant 0 : i32
    %c0_i32_1 = arith.constant 0 : i32
    return %c0_i32, %c0_i32_0 : i32, i32
  }
  func.func @transform_4(%arg0: i32) -> (i32, i32) {
    %c0_i32 = arith.constant 0 : i32
    %c0_i32_0 = arith.constant 0 : i32
    %c0_i32_1 = arith.constant 0 : i32
    return %c0_i32, %c0_i32_0 : i32, i32
  }
  func.func @transform_5(%arg0: i32) -> (i32, i32) {
    %c0_i32 = arith.constant 0 : i32
    %c0_i32_0 = arith.constant 0 : i32
    %c0_i32_1 = arith.constant 0 : i32
    return %c0_i32, %c0_i32_0 : i32, i32
  }
  func.func @transform_6(%arg0: i32) -> (i32, i32) {
    %c0_i32 = arith.constant 0 : i32
    %c0_i32_0 = arith.constant 0 : i32
    %c0_i32_1 = arith.constant 0 : i32
    return %c0_i32, %c0_i32_0 : i32, i32
  }
  func.func @transform_7(%arg0: i32) -> (i32, i32) {
    %c0_i32 = arith.constant 0 : i32
    %c0_i32_0 = arith.constant 0 : i32
    return %arg0, %c0_i32 : i32, i32
  }
}

</mosaic_0001>

<bundles_post_ra>
// kernel: tpu_custom_call.1
= control target key start
LH: loop header
LB: loop body
LE: loop exit
PB: predicated region body
PF: predicated region fallthrough
CT: control target
= control target key end

     0   :  { %12 = vsyncpa [#allocation3], 0  ;;  %s4159_s0 = inlined_call_operand.hbm [shape: bf16[16,128], index: 0, kind: input, shape index: {}]   ;;  %s4160_s1 = inlined_call_operand.hbm [shape: bf16[128,1024], index: 1, kind: input, shape index: {}]   ;;  %s4161_s2 = inlined_call_operand.hbm [shape: f32[1,1024], index: 2, kind: input, shape index: {}]   ;;  %s4162_s3 = inlined_call_operand.hbm [shape: bf16[1024,512], index: 3, kind: input, shape index: {}]   ;;  %s4163_s4 = inlined_call_operand.vmem [shape: f32[1,512], index: 4, kind: input, shape index: {}]   ;;  %s4164_s5 = inlined_call_operand.hbm [shape: bf16[512,128], index: 5, kind: input, shape index: {}]   ;;  %s4165_s6 = inlined_call_operand.vmem [shape: f32[1,128], index: 6, kind: input, shape index: {}]   ;;  %s4166_s7 = inlined_call_operand.hbm [shape: bf16[16,128], index: 7, kind: output, shape index: {}]  }
   0x1   :  { %13 = vsyncpa [#allocation6], 0 }
   0x2   :  { %14 = vsyncpa [#allocation9], 0 }
   0x3   :  { %15 = vsyncpa [#allocation4], 0  ;;  %s3983_s24 = smov [#allocation5]  }
   0x4   :  { %s33_s25 = sshll.u32 %s3983_s24, 4  ;;  %s34_s25 = int_to_ptr.vmem [resolvable:$true] %s33_s25 }
   0x5   :  { %s3863_s26 = scalar_lea.vmem %s34_s25, 8192  ;;  %p3868_p1 = scmp.lt.s32.totalorder %s34_s25, %s34_s25 }
   0x6   :  { %p3864_p0 = scmp.ne.s32.totalorder %s34_s25, %s3863_s26  ;;  %p3869_p2 = scmp.lt.s32.totalorder %s3863_s26, %s3863_s26 }
   0x8   :  { %p3870_p3 = por %p3869_p2, %p3868_p1 }
   0xa   :  { %p3871_p4 = pnand %p3870_p3, %p3864_p0 }
   0xc   :  { %3874 = shalt.err (!%p3871_p4)
}
   0xd   :  { %s3984_s27 = smov 512   ;;  %s3985_s28 = smov 32  }
   0xe   :  { %39 = dma.hbm_to_vmem [thread:$0]  %s4160_s1, 8192, %s34_s25, [#allocation6], %s3984_s27, %s3984_s27, %s3985_s28  }
   0xf   :  { %s3986_s8 = smov [#allocation8]  }
  0x10   :  { %s55_s9 = sshll.u32 %s3986_s8, 4  ;;  %s56_s9 = int_to_ptr.vmem [resolvable:$true] %s55_s9 }
  0x11   :  { %s3883_s10 = scalar_lea.vmem %s56_s9, 32768  ;;  %p3888_p6 = scmp.lt.s32.totalorder %s56_s9, %s56_s9 }
  0x12   :  { %p3884_p5 = scmp.ne.s32.totalorder %s56_s9, %s3883_s10  ;;  %p3889_p7 = scmp.lt.s32.totalorder %s3883_s10, %s3883_s10 }
  0x14   :  { %p3890_p8 = por %p3889_p7, %p3888_p6 }
  0x16   :  { %p3891_p9 = pnand %p3890_p8, %p3884_p5 }
  0x18   :  { %3894 = shalt.err (!%p3891_p9)
}
  0x19   :  { %s3987_s11 = smov 256   ;;  %s3988_s12 = smov 16  }
  0x1a   :  { %61 = dma.hbm_to_vmem [thread:$0]  %s4162_s3, 32768, %s56_s9, [#allocation9], %s3987_s11, %s3987_s11, %s3988_s12  }
  0x1b   :  { %s3989_s15 = smov [#allocation2]  }
  0x1c   :  { %s21_s16 = sshll.u32 %s3989_s15, 4  ;;  %s22_s16 = int_to_ptr.vmem [resolvable:$true] %s21_s16 }
  0x1d   :  { %s3903_s1 = scalar_lea.vmem %s22_s16, 128  ;;  %p3908_p11 = scmp.lt.s32.totalorder %s22_s16, %s22_s16 }
  0x1e   :  { %p3904_p10 = scmp.ne.s32.totalorder %s22_s16, %s3903_s1  ;;  %p3909_p12 = scmp.lt.s32.totalorder %s3903_s1, %s3903_s1 }
  0x20   :  { %p3910_p13 = por %p3909_p12, %p3908_p11 }
  0x22   :  { %p3911_p0 = pnand %p3910_p13, %p3904_p10 }
  0x24   :  { %3914 = shalt.err (!%p3911_p0)
}
  0x25   :  { %s3990_s17 = smov 64   ;;  %s3991_s18 = smov 4  }
  0x26   :  { %27 = dma.hbm_to_vmem [thread:$0]  %s4159_s0, 128, %s22_s16, [#allocation3], %s3990_s17, %s3990_s17, %s3991_s18  }
  0x27   :  { %s3992_s3 = smov [#allocation7]   ;;  %s3993_s22 = smov [#allocation10]  }
  0x28   :  { %s46_s21 = sshll.u32 %s3992_s3, 4  ;;  %s69_s23 = sshll.u32 %s3993_s22, 4  ;;  %s47_s21 = int_to_ptr.vmem [resolvable:$true] %s46_s21  ;;  %s70_s23 = int_to_ptr.vmem [resolvable:$true] %s69_s23 }
  0x29   :  { %s3923_s24 = scalar_lea.vmem %s47_s21, 128  ;;  %p3928_p2 = scmp.lt.s32.totalorder %s47_s21, %s47_s21 }
  0x2a   :  { %p3924_p1 = scmp.ne.s32.totalorder %s47_s21, %s3923_s24  ;;  %p3929_p3 = scmp.lt.s32.totalorder %s3923_s24, %s3923_s24 }
  0x2c   :  { %p3930_p4 = por %p3929_p3, %p3928_p2 }
  0x2e   :  { %p3931_p5 = pnand %p3930_p4, %p3924_p1 }
  0x30   :  { %3934 = shalt.err (!%p3931_p5)
}
  0x31   :  { %49 = dma.hbm_to_vmem [thread:$0]  %s4161_s2, 128, %s47_s21, [#allocation6]  }
  0x32   :  { %s3943_s27 = scalar_lea.vmem %s70_s23, 4096  ;;  %p3948_p7 = scmp.lt.s32.totalorder %s70_s23, %s70_s23 }
  0x33   :  { %p3944_p6 = scmp.ne.s32.totalorder %s70_s23, %s3943_s27  ;;  %p3949_p8 = scmp.lt.s32.totalorder %s3943_s27, %s3943_s27 }
  0x35   :  { %p3950_p9 = por %p3949_p8, %p3948_p7 }
  0x37   :  { %p3951_p10 = pnand %p3950_p9, %p3944_p6 }
  0x39   :  { %3954 = shalt.err (!%p3951_p10)
}
  0x3a   :  { %75 = dma.hbm_to_vmem [thread:$0]  %s4164_s5, 4096, %s70_s23, [#allocation9], %s3990_s17, %s3990_s17, %s3991_s18  }
  0x3b   :  { %3975 = dma.done.wait [#allocation3], 128  }
  0x3c   :  { %3976 = vsyncadd [#allocation3], 4294967168 }
  0x3d   :  { %3977 = dma.done.wait [#allocation6], 8320  }
  0x3e   :  { %3978 = vsyncadd [#allocation6], 4294958976 }
  0x3f   :  { %3979 = dma.done.wait [#allocation9], 36864  }
  0x40   :  { %3980 = vsyncadd [#allocation9], 4294930432  ;;  %v3994_v0 = vmov 0   ;;  %v152_v1 = vld [vmem:[#allocation5 + $0x1c0] sm:$0xff]  ;;  %v153_v3 = vld [vmem:[#allocation5 + $0x1c8] sm:$0xff]  ;;  %s3995_s30 = smov [#allocation11]  }
  0x41   :  { %560 = vmatprep.mubr.bf16.mxu0 %v3994_v0  ;;  %603 = vmatprep.mubr.bf16.mxu1 %v3994_v0  ;;  %v156_v2 = vld [vmem:[#allocation5 + $0x1e0] sm:$0xff]  ;;  %v157_v5 = vld [vmem:[#allocation5 + $0x1e8] sm:$0xff]  ;;  %v154_v62 = vld [vmem:[#allocation5 + $0x1d0] sm:$0xff]  ;;  %s3000_s8 = sshll.u32 %s3995_s30, 4  ;;  %s3001_s8 = int_to_ptr.vmem [resolvable:$true] %s3000_s8 }
  0x42   :  { %v3072_v4 = vcombine.high %v152_v1, %v156_v2  ;;  %v3071_v6 = vcombine.low %v152_v1, %v156_v2  ;;  %v144_v7 = vld [vmem:[#allocation5 + $0x180] sm:$0xff]  ;;  %v3074_v9 = vcombine.high %v153_v3, %v157_v5  ;;  %v3073_v10 = vcombine.low %v153_v3, %v157_v5  ;;  %v145_v12 = vld [vmem:[#allocation5 + $0x188] sm:$0xff]  ;;  %v158_v1 = vld [vmem:[#allocation5 + $0x1f0] sm:$0xff]  ;;  %p3960_p12 = scmp.lt.s32.totalorder %s3001_s8, %s3001_s8 }
  0x43   :  { %v148_v8 = vld [vmem:[#allocation5 + $0x1a0] sm:$0xff]  ;;  %v149_v13 = vld [vmem:[#allocation5 + $0x1a8] sm:$0xff]  ;;  %v155_v2 = vld [vmem:[#allocation5 + $0x1d8] sm:$0xff] }
  0x44   :  { %v3064_v11 = vcombine.high %v144_v7, %v148_v8  ;;  %v136_v14 = vld [vmem:[#allocation5 + $0x140] sm:$0xff]  ;;  %528 = vmatprep.subr.bf16.mxu0 %v3072_v4  ;;  %v3066_v15 = vcombine.high %v145_v12, %v149_v13  ;;  %v137_v17 = vld [vmem:[#allocation5 + $0x148] sm:$0xff]  ;;  %571 = vmatprep.subr.bf16.mxu1 %v3074_v9  ;;  %v3063_v19 = vcombine.low %v144_v7, %v148_v8  ;;  %v159_v3 = vld [vmem:[#allocation5 + $0x1f8] sm:$0xff] }
  0x45   :  { %v140_v16 = vld [vmem:[#allocation5 + $0x160] sm:$0xff]  ;;  %v141_v18 = vld [vmem:[#allocation5 + $0x168] sm:$0xff]  ;;  %529 = vmatpush1.bf16.msra.mxu0 %v3071_v6  ;;  %572 = vmatpush1.bf16.msra.mxu1 %v3073_v10  ;;  %v3065_v20 = vcombine.low %v145_v12, %v149_v13  ;;  %v4059_v6 = vld [vmem:[#allocation2] sm:$0xff]   ;;  %v3076_v7 = vcombine.high %v154_v62, %v158_v1  ;;  %v3078_v9 = vcombine.high %v155_v2, %v159_v3 }
  0x46   :  { %530 = vmatprep.subr.bf16.mxu0 %v3064_v11  ;;  %v3056_v21 = vcombine.high %v136_v14, %v140_v16  ;;  %573 = vmatprep.subr.bf16.mxu1 %v3066_v15  ;;  %v3058_v22 = vcombine.high %v137_v17, %v141_v18  ;;  %v128_v23 = vld [vmem:[#allocation5 + $0x100] sm:$0xff]  ;;  %v129_v25 = vld [vmem:[#allocation5 + $0x108] sm:$0xff]  ;;  %v3055_v27 = vcombine.low %v136_v14, %v140_v16  ;;  %v146_v8 = vld [vmem:[#allocation5 + $0x190] sm:$0xff] }
  0x47   :  { %v132_v24 = vld [vmem:[#allocation5 + $0x120] sm:$0xff]  ;;  %v133_v26 = vld [vmem:[#allocation5 + $0x128] sm:$0xff]  ;;  %v3057_v28 = vcombine.low %v137_v17, %v141_v18  ;;  %v150_v10 = vld [vmem:[#allocation5 + $0x1b0] sm:$0xff]  ;;  %v3075_v13 = vcombine.low %v154_v62, %v158_v1  ;;  %v3077_v14 = vcombine.low %v155_v2, %v159_v3 }
  0x48   :  { %v3048_v29 = vcombine.high %v128_v23, %v132_v24  ;;  %v3050_v30 = vcombine.high %v129_v25, %v133_v26  ;;  %v120_v31 = vld [vmem:[#allocation5 + $0xc0] sm:$0xff]  ;;  %v121_v33 = vld [vmem:[#allocation5 + $0xc8] sm:$0xff]  ;;  %v3047_v35 = vcombine.low %v128_v23, %v132_v24  ;;  %v3049_v36 = vcombine.low %v129_v25, %v133_v26  ;;  %v147_v11 = vld [vmem:[#allocation5 + $0x198] sm:$0xff] }
  0x49   :  { %531 = vmatpush1.bf16.msra.mxu0 %v3063_v19  ;;  %574 = vmatpush1.bf16.msra.mxu1 %v3065_v20  ;;  %v124_v32 = vld [vmem:[#allocation5 + $0xe0] sm:$0xff]  ;;  %v125_v34 = vld [vmem:[#allocation5 + $0xe8] sm:$0xff]  ;;  %v151_v12 = vld [vmem:[#allocation5 + $0x1b8] sm:$0xff]  ;;  %v3068_v15 = vcombine.high %v146_v8, %v150_v10 }
  0x4a   :  { %532 = vmatprep.subr.bf16.mxu0 %v3056_v21  ;;  %575 = vmatprep.subr.bf16.mxu1 %v3058_v22  ;;  %v3040_v37 = vcombine.high %v120_v31, %v124_v32  ;;  %v3042_v38 = vcombine.high %v121_v33, %v125_v34  ;;  %v112_v39 = vld [vmem:[#allocation5 + $0x80] sm:$0xff]  ;;  %v113_v41 = vld [vmem:[#allocation5 + $0x88] sm:$0xff]  ;;  %v3039_v43 = vcombine.low %v120_v31, %v124_v32  ;;  %v138_v16 = vld [vmem:[#allocation5 + $0x150] sm:$0xff] }
  0x4b   :  { %v116_v40 = vld [vmem:[#allocation5 + $0xa0] sm:$0xff]  ;;  %v117_v42 = vld [vmem:[#allocation5 + $0xa8] sm:$0xff]  ;;  %v3041_v44 = vcombine.low %v121_v33, %v125_v34  ;;  %v3070_v17 = vcombine.high %v147_v11, %v151_v12  ;;  %v142_v18 = vld [vmem:[#allocation5 + $0x170] sm:$0xff]  ;;  %v3067_v21 = vcombine.low %v146_v8, %v150_v10  ;;  %v3069_v22 = vcombine.low %v147_v11, %v151_v12 }
  0x4c   :  { %v3032_v45 = vcombine.high %v112_v39, %v116_v40  ;;  %v3034_v46 = vcombine.high %v113_v41, %v117_v42  ;;  %v104_v47 = vld [vmem:[#allocation5 + $0x40] sm:$0xff]  ;;  %v105_v49 = vld [vmem:[#allocation5 + $0x48] sm:$0xff]  ;;  %v3031_v51 = vcombine.low %v112_v39, %v116_v40  ;;  %v3033_v52 = vcombine.low %v113_v41, %v117_v42  ;;  %v139_v19 = vld [vmem:[#allocation5 + $0x158] sm:$0xff] }
  0x4d   :  { %533 = vmatpush1.bf16.msra.mxu0 %v3055_v27  ;;  %576 = vmatpush1.bf16.msra.mxu1 %v3057_v28  ;;  %v108_v48 = vld [vmem:[#allocation5 + $0x60] sm:$0xff]  ;;  %v109_v50 = vld [vmem:[#allocation5 + $0x68] sm:$0xff]  ;;  %v143_v20 = vld [vmem:[#allocation5 + $0x178] sm:$0xff]  ;;  %v3060_v23 = vcombine.high %v138_v16, %v142_v18 }
  0x4e   :  { %534 = vmatprep.subr.bf16.mxu0 %v3048_v29  ;;  %577 = vmatprep.subr.bf16.mxu1 %v3050_v30  ;;  %v3024_v53 = vcombine.high %v104_v47, %v108_v48  ;;  %v96_v54 = vld [vmem:[#allocation5] sm:$0xff]  ;;  %v3026_v55 = vcombine.high %v105_v49, %v109_v50  ;;  %v97_v57 = vld [vmem:[#allocation5 + $0x8] sm:$0xff]  ;;  %v3023_v59 = vcombine.low %v104_v47, %v108_v48  ;;  %v130_v24 = vld [vmem:[#allocation5 + $0x110] sm:$0xff] }
  0x4f   :  { %v100_v56 = vld [vmem:[#allocation5 + $0x20] sm:$0xff]  ;;  %v101_v58 = vld [vmem:[#allocation5 + $0x28] sm:$0xff]  ;;  %v3025_v60 = vcombine.low %v105_v49, %v109_v50  ;;  %v3062_v25 = vcombine.high %v139_v19, %v143_v20  ;;  %v134_v26 = vld [vmem:[#allocation5 + $0x130] sm:$0xff]  ;;  %v3059_v29 = vcombine.low %v138_v16, %v142_v18  ;;  %v3061_v30 = vcombine.low %v139_v19, %v143_v20 }
  0x50   :  { %v3016_v61 = vcombine.high %v96_v54, %v100_v56  ;;  %v3018_v63 = vcombine.high %v97_v57, %v101_v58  ;;  %v3015_v4 = vcombine.low %v96_v54, %v100_v56  ;;  %v3017_v5 = vcombine.low %v97_v57, %v101_v58  ;;  %v131_v27 = vld [vmem:[#allocation5 + $0x118] sm:$0xff]  ;;  %v122_v32 = vld [vmem:[#allocation5 + $0xd0] sm:$0xff] }
  0x51   :  { %535 = vmatpush1.bf16.msra.mxu0 %v3047_v35  ;;  %578 = vmatpush1.bf16.msra.mxu1 %v3049_v36  ;;  %v135_v28 = vld [vmem:[#allocation5 + $0x138] sm:$0xff]  ;;  %v3052_v31 = vcombine.high %v130_v24, %v134_v26  ;;  %v126_v34 = vld [vmem:[#allocation5 + $0xf0] sm:$0xff] }
  0x52   :  { %536 = vmatprep.subr.bf16.mxu0 %v3040_v37  ;;  %579 = vmatprep.subr.bf16.mxu1 %v3042_v38  ;;  %v3054_v33 = vcombine.high %v131_v27, %v135_v28  ;;  %v123_v35 = vld [vmem:[#allocation5 + $0xd8] sm:$0xff]  ;;  %v3051_v37 = vcombine.low %v130_v24, %v134_v26  ;;  %v3053_v38 = vcombine.low %v131_v27, %v135_v28  ;;  %v114_v40 = vld [vmem:[#allocation5 + $0x90] sm:$0xff] }
  0x53   :  { %v127_v36 = vld [vmem:[#allocation5 + $0xf8] sm:$0xff]  ;;  %v3044_v39 = vcombine.high %v122_v32, %v126_v34  ;;  %v118_v41 = vld [vmem:[#allocation5 + $0xb0] sm:$0xff] }
  0x54   :  { %v115_v42 = vld [vmem:[#allocation5 + $0x98] sm:$0xff]  ;;  %v106_v47 = vld [vmem:[#allocation5 + $0x50] sm:$0xff] }
  0x55   :  { %537 = vmatpush1.bf16.msra.mxu0 %v3039_v43  ;;  %580 = vmatpush1.bf16.msra.mxu1 %v3041_v44  ;;  %v119_v43 = vld [vmem:[#allocation5 + $0xb8] sm:$0xff]  ;;  %v3043_v44 = vcombine.low %v122_v32, %v126_v34  ;;  %v110_v49 = vld [vmem:[#allocation5 + $0x70] sm:$0xff] }
  0x56   :  { %538 = vmatprep.subr.bf16.mxu0 %v3032_v45  ;;  %581 = vmatprep.subr.bf16.mxu1 %v3034_v46  ;;  %v3045_v45 = vcombine.low %v123_v35, %v127_v36  ;;  %v3036_v46 = vcombine.high %v114_v40, %v118_v41  ;;  %v3038_v48 = vcombine.high %v115_v42, %v119_v43  ;;  %v107_v50 = vld [vmem:[#allocation5 + $0x58] sm:$0xff]  ;;  %v102_v57 = vld [vmem:[#allocation5 + $0x30] sm:$0xff] }
  0x57   :  { %v3028_v54 = vcombine.high %v106_v47, %v110_v49  ;;  %v99_v58 = vld [vmem:[#allocation5 + $0x18] sm:$0xff] }
  0x58   :  { %v3437_v1 = vld [vmem:[#allocation8 + $0xe4] ss:$16 sps:$4 sm:$0xff]   ;;  %v3441_v10 = vld [vmem:[#allocation8 + $0xc0] ss:$16 sps:$4 sm:$0xff]  }
  0x59   :  { %539 = vmatpush1.bf16.msra.mxu0 %v3031_v51  ;;  %582 = vmatpush1.bf16.msra.mxu1 %v3033_v52  ;;  %v111_v51 = vld [vmem:[#allocation5 + $0x78] sm:$0xff]  ;;  %v3035_v52 = vcombine.low %v114_v40, %v118_v41 }
  0x5a   :  { %540 = vmatprep.subr.bf16.mxu0 %v3024_v53  ;;  %583 = vmatprep.subr.bf16.mxu1 %v3026_v55  ;;  %v3037_v53 = vcombine.low %v115_v42, %v119_v43  ;;  %v98_v55 = vld [vmem:[#allocation5 + $0x10] sm:$0xff]  ;;  %v3030_v56 = vcombine.high %v107_v50, %v111_v51  ;;  %v3440_v3 = vld [vmem:[#allocation8 + $0x2e4] ss:$16 sps:$4 sm:$0xff]   ;;  %v3444_v11 = vld [vmem:[#allocation8 + $0x2c0] ss:$16 sps:$4 sm:$0xff]  }
  0x5b   :  { %v3020_v62 = vcombine.high %v98_v55, %v102_v57  ;;  %v3019_v2 = vcombine.low %v98_v55, %v102_v57  ;;  %v3443_v8 = vld [vmem:[#allocation8 + $0xc4] ss:$16 sps:$4 sm:$0xff]   ;;  %v3453_v18 = vld [vmem:[#allocation8 + $0x80] ss:$16 sps:$4 sm:$0xff]  }
  0x5c   :  { %v3449_v12 = vld [vmem:[#allocation8 + $0xa4] ss:$16 sps:$4 sm:$0xff]   ;;  %v3456_v19 = vld [vmem:[#allocation8 + $0x280] ss:$16 sps:$4 sm:$0xff]  }
  0x5d   :  { %541 = vmatpush1.bf16.msra.mxu0 %v3023_v59  ;;  %584 = vmatpush1.bf16.msra.mxu1 %v3025_v60  ;;  %v103_v59 = vld [vmem:[#allocation5 + $0x38] sm:$0xff]  ;;  %v3027_v60 = vcombine.low %v106_v47, %v110_v49 }
  0x5e   :  { %542 = vmatprep.subr.bf16.mxu0 %v3016_v61  ;;  %585 = vmatprep.subr.bf16.mxu1 %v3018_v63  ;;  %v3029_v61 = vcombine.low %v107_v50, %v111_v51  ;;  %v3022_v63 = vcombine.high %v99_v58, %v103_v59  ;;  %v3455_v16 = vld [vmem:[#allocation8 + $0x84] ss:$16 sps:$4 sm:$0xff]   ;;  %v3468_v26 = vld [vmem:[#allocation8 + $0x240] ss:$16 sps:$4 sm:$0xff]  }
  0x5f   :  { %v3461_v20 = vld [vmem:[#allocation8 + $0x64] ss:$16 sps:$4 sm:$0xff]   ;;  %v3480_v34 = vld [vmem:[#allocation8 + $0x200] ss:$16 sps:$4 sm:$0xff]  }
  0x60   :  { %v3470_v24 = vld [vmem:[#allocation8 + $0x244] ss:$16 sps:$4 sm:$0xff]   ;;  %v3492_v41 = vld [vmem:[#allocation8 + $0x3c0] ss:$16 sps:$4 sm:$0xff]  }
  0x61   :  { %543 = vmatpush1.bf16.msra.mxu0 %v3015_v4  ;;  %586 = vmatpush1.bf16.msra.mxu1 %v3017_v5  ;;  %v3021_v4 = vcombine.low %v99_v58, %v103_v59  ;;  %v3435_v5 = vld [vmem:[#allocation8 + $0xe0] ss:$16 sps:$4 sm:$0xff]   ;;  %v3473_v27 = vld [vmem:[#allocation8 + $0x24] ss:$16 sps:$4 sm:$0xff]  }
  0x62   :  { %614 = vmatprep.subr.bf16.mxu0 %v3076_v7  ;;  %657 = vmatprep.subr.bf16.mxu1 %v3078_v9  ;;  %v3438_v7 = vld [vmem:[#allocation8 + $0x2e0] ss:$16 sps:$4 sm:$0xff]   ;;  %v3446_v9 = vld [vmem:[#allocation8 + $0x2c4] ss:$16 sps:$4 sm:$0xff]  }
  0x63   :  { %v3476_v28 = vld [vmem:[#allocation8 + $0x224] ss:$16 sps:$4 sm:$0xff]   ;;  %v3504_v49 = vld [vmem:[#allocation8 + $0x380] ss:$16 sps:$4 sm:$0xff]  }
  0x64   :  { %561 = vmatmul.mubr.bf16.vlgmr.msra.gmra.mxu0 %v4059_v6  ;;  %604 = vmatmul.mubr.bf16.vlgmr.msra.gmra.mxu1 %v4059_v6  ;;  %v3482_v32 = vld [vmem:[#allocation8 + $0x204] ss:$16 sps:$4 sm:$0xff]   ;;  %v3516_v57 = vld [vmem:[#allocation8 + $0x340] ss:$16 sps:$4 sm:$0xff]  }
  0x65   :  { %615 = vmatpush1.bf16.msra.mxu0 %v3075_v13  ;;  %658 = vmatpush1.bf16.msra.mxu1 %v3077_v14  ;;  %v3452_v13 = vld [vmem:[#allocation8 + $0x2a4] ss:$16 sps:$4 sm:$0xff]   ;;  %v3447_v14 = vld [vmem:[#allocation8 + $0xa0] ss:$16 sps:$4 sm:$0xff]  }
  0x66   :  { %616 = vmatprep.subr.bf16.mxu0 %v3068_v15  ;;  %659 = vmatprep.subr.bf16.mxu1 %v3070_v17  ;;  %v3450_v15 = vld [vmem:[#allocation8 + $0x2a0] ss:$16 sps:$4 sm:$0xff]   ;;  %v3458_v17 = vld [vmem:[#allocation8 + $0x284] ss:$16 sps:$4 sm:$0xff]  }
  0x67   :  { %646 = vmatprep.mubr.bf16.mxu0 %v3994_v0  ;;  %689 = vmatprep.mubr.bf16.mxu1 %v3994_v0  ;;  %v3046_v0 = vcombine.high %v123_v35, %v127_v36  ;;  %v3485_v35 = vld [vmem:[#allocation8 + $0x1e4] ss:$16 sps:$4 sm:$0xff]  }
  0x68   :  { %v3488_v36 = vld [vmem:[#allocation8 + $0x3e4] ss:$16 sps:$4 sm:$0xff]  }
  0x69   :  { %617 = vmatpush1.bf16.msra.mxu0 %v3067_v21  ;;  %660 = vmatpush1.bf16.msra.mxu1 %v3069_v22  ;;  %v3464_v21 = vld [vmem:[#allocation8 + $0x264] ss:$16 sps:$4 sm:$0xff]   ;;  %v3462_v22 = vld [vmem:[#allocation8 + $0x260] ss:$16 sps:$4 sm:$0xff]  }
  0x6a   :  { %618 = vmatprep.subr.bf16.mxu0 %v3060_v23  ;;  %661 = vmatprep.subr.bf16.mxu1 %v3062_v25  ;;  %v3467_v23 = vld [vmem:[#allocation8 + $0x44] ss:$16 sps:$4 sm:$0xff]   ;;  %v3465_v25 = vld [vmem:[#allocation8 + $0x40] ss:$16 sps:$4 sm:$0xff]  }
  0x6b   :  { %v3494_v40 = vld [vmem:[#allocation8 + $0x3c4] ss:$16 sps:$4 sm:$0xff]  }
  0x6c   :  { %v3497_v42 = vld [vmem:[#allocation8 + $0x1a4] ss:$16 sps:$4 sm:$0xff]  }
  0x6d   :  { %619 = vmatpush1.bf16.msra.mxu0 %v3059_v29  ;;  %662 = vmatpush1.bf16.msra.mxu1 %v3061_v30  ;;  %v3471_v29 = vld [vmem:[#allocation8 + $0x20] ss:$16 sps:$4 sm:$0xff]   ;;  %v3500_v43 = vld [vmem:[#allocation8 + $0x3a4] ss:$16 sps:$4 sm:$0xff]  }
  0x6e   :  { %620 = vmatprep.subr.bf16.mxu0 %v3052_v31  ;;  %663 = vmatprep.subr.bf16.mxu1 %v3054_v33  ;;  %v3474_v30 = vld [vmem:[#allocation8 + $0x220] ss:$16 sps:$4 sm:$0xff]   ;;  %v3479_v31 = vld [vmem:[#allocation8 + $0x4] ss:$16 sps:$4 sm:$0xff]  }
  0x6f   :  { %v3477_v33 = vld [vmem:[#allocation8] ss:$16 sps:$4 sm:$0xff]   ;;  %v3506_v47 = vld [vmem:[#allocation8 + $0x384] ss:$16 sps:$4 sm:$0xff]  }
  0x70   :  { %v3509_v50 = vld [vmem:[#allocation8 + $0x164] ss:$16 sps:$4 sm:$0xff]  }
  0x71   :  { %621 = vmatpush1.bf16.msra.mxu0 %v3051_v37  ;;  %664 = vmatpush1.bf16.msra.mxu1 %v3053_v38  ;;  %v3483_v37 = vld [vmem:[#allocation8 + $0x1e0] ss:$16 sps:$4 sm:$0xff]   ;;  %v3512_v51 = vld [vmem:[#allocation8 + $0x364] ss:$16 sps:$4 sm:$0xff]  }
  0x72   :  { %622 = vmatprep.subr.bf16.mxu0 %v3044_v39  ;;  %665 = vmatprep.subr.bf16.mxu1 %v3046_v0  ;;  %v3486_v38 = vld [vmem:[#allocation8 + $0x3e0] ss:$16 sps:$4 sm:$0xff]   ;;  %v3491_v39 = vld [vmem:[#allocation8 + $0x1c4] ss:$16 sps:$4 sm:$0xff]  }
  0x73   :  { %v3489_v0 = vld [vmem:[#allocation8 + $0x1c0] ss:$16 sps:$4 sm:$0xff]   ;;  %v3518_v55 = vld [vmem:[#allocation8 + $0x344] ss:$16 sps:$4 sm:$0xff]  }
  0x74   :  { %v3521_v58 = vld [vmem:[#allocation8 + $0x124] ss:$16 sps:$4 sm:$0xff]  }
  0x75   :  { %623 = vmatpush1.bf16.msra.mxu0 %v3043_v44  ;;  %666 = vmatpush1.bf16.msra.mxu1 %v3045_v45  ;;  %v3495_v44 = vld [vmem:[#allocation8 + $0x1a0] ss:$16 sps:$4 sm:$0xff]   ;;  %v3524_v59 = vld [vmem:[#allocation8 + $0x324] ss:$16 sps:$4 sm:$0xff]  }
  0x76   :  { %624 = vmatprep.subr.bf16.mxu0 %v3036_v46  ;;  %667 = vmatprep.subr.bf16.mxu1 %v3038_v48  ;;  %v3498_v45 = vld [vmem:[#allocation8 + $0x3a0] ss:$16 sps:$4 sm:$0xff]   ;;  %v3503_v46 = vld [vmem:[#allocation8 + $0x184] ss:$16 sps:$4 sm:$0xff]  }
  0x77   :  { %v3501_v48 = vld [vmem:[#allocation8 + $0x180] ss:$16 sps:$4 sm:$0xff]  }
  0x79   :  { %625 = vmatpush1.bf16.msra.mxu0 %v3035_v52  ;;  %668 = vmatpush1.bf16.msra.mxu1 %v3037_v53  ;;  %v3507_v52 = vld [vmem:[#allocation8 + $0x160] ss:$16 sps:$4 sm:$0xff]  }
  0x7a   :  { %626 = vmatprep.subr.bf16.mxu0 %v3028_v54  ;;  %669 = vmatprep.subr.bf16.mxu1 %v3030_v56  ;;  %v3510_v53 = vld [vmem:[#allocation8 + $0x360] ss:$16 sps:$4 sm:$0xff]   ;;  %v3515_v54 = vld [vmem:[#allocation8 + $0x144] ss:$16 sps:$4 sm:$0xff]  }
  0x7b   :  { %v3513_v56 = vld [vmem:[#allocation8 + $0x140] ss:$16 sps:$4 sm:$0xff]  }
  0x7d   :  { %627 = vmatpush1.bf16.msra.mxu0 %v3027_v60  ;;  %670 = vmatpush1.bf16.msra.mxu1 %v3029_v61  ;;  %v3519_v60 = vld [vmem:[#allocation8 + $0x120] ss:$16 sps:$4 sm:$0xff]  }
  0x7e   :  { %628 = vmatprep.subr.bf16.mxu0 %v3020_v62  ;;  %671 = vmatprep.subr.bf16.mxu1 %v3022_v63  ;;  %v3522_v61 = vld [vmem:[#allocation8 + $0x320] ss:$16 sps:$4 sm:$0xff]   ;;  %v3527_v62 = vld [vmem:[#allocation8 + $0x104] ss:$16 sps:$4 sm:$0xff]  }
  0x7f   :  { %v3530_v63 = vld [vmem:[#allocation8 + $0x304] ss:$16 sps:$4 sm:$0xff]  }
  0x81   :  { %629 = vmatpush1.bf16.msra.mxu0 %v3019_v2  ;;  %672 = vmatpush1.bf16.msra.mxu1 %v3021_v4  ;;  %v3528_v2 = vld [vmem:[#allocation8 + $0x300] ss:$16 sps:$4 sm:$0xff]   ;;  %v3536_v4 = vld [vmem:[#allocation8 + $0x6e4] ss:$16 sps:$4 sm:$0xff]  }
  0x82   :  { %2282 = vmatprep.subr.bf16.mxu0 %v3437_v1  ;;  %2325 = vmatprep.subr.bf16.mxu1 %v3440_v3  ;;  %v3525_v1 = vld [vmem:[#allocation8 + $0x100] ss:$16 sps:$4 sm:$0xff]   ;;  %v3533_v3 = vld [vmem:[#allocation8 + $0x4e4] ss:$16 sps:$4 sm:$0xff]  }
  0x84   :  { %647 = vmatmul.mubr.bf16.vlgmr.msra.gmra.mxu0 %v4059_v6  ;;  %690 = vmatmul.mubr.bf16.vlgmr.msra.gmra.mxu1 %v4059_v6  ;;  %v3459_v6 = vld [vmem:[#allocation8 + $0x60] ss:$16 sps:$4 sm:$0xff]  }
  0x85   :  { %2283 = vmatpush1.bf16.msra.mxu0 %v3435_v5  ;;  %2326 = vmatpush1.bf16.msra.mxu1 %v3438_v7  ;;  %v162_v5 = vlaneseq }
  0x86   :  { %2284 = vmatprep.subr.bf16.mxu0 %v3443_v8  ;;  %2327 = vmatprep.subr.bf16.mxu1 %v3446_v9 }
  0x87   :  { %v4067_v7 = vshrl.u32 %v162_v5, 7  ;;  %v3569_v5 = vld [vmem:[#allocation8 + $0x424] ss:$16 sps:$4 sm:$0xff]  }
  0x89   :  { %2285 = vmatpush1.bf16.msra.mxu0 %v3441_v10  ;;  %2328 = vmatpush1.bf16.msra.mxu1 %v3444_v11  ;;  %v168_v8 = vsub.s32 1, %v4067_v7  ;;  %v164_v9 = vsub.s32 0, %v4067_v7  ;;  %v176_v10 = vsub.s32 3, %v4067_v7  ;;  %v4072_v11 = vld [vmem:[#allocation7] sm:$0xff] }
  0x8a   :  { %2286 = vmatprep.subr.bf16.mxu0 %v3449_v12  ;;  %2329 = vmatprep.subr.bf16.mxu1 %v3452_v13  ;;  %v172_v12 = vsub.s32 2, %v4067_v7 }
  0x8d   :  { %2287 = vmatpush1.bf16.msra.mxu0 %v3447_v14  ;;  %2330 = vmatpush1.bf16.msra.mxu1 %v3450_v15  ;;  %v169_v15 = vrot.slane %v4072_v11, %v168_v8 }
  0x8e   :  { %2288 = vmatprep.subr.bf16.mxu0 %v3455_v16  ;;  %2331 = vmatprep.subr.bf16.mxu1 %v3458_v17  ;;  %v165_v16 = vrot.slane %v4072_v11, %v164_v9 }
  0x91   :  { %2289 = vmatpush1.bf16.msra.mxu0 %v3453_v18  ;;  %2332 = vmatpush1.bf16.msra.mxu1 %v3456_v19  ;;  %v177_v18 = vrot.slane %v4072_v11, %v176_v10  ;;  %v173_v19 = vrot.slane %v4072_v11, %v172_v12 }
  0x92   :  { %2290 = vmatprep.subr.bf16.mxu0 %v3461_v20  ;;  %2333 = vmatprep.subr.bf16.mxu1 %v3464_v21 }
  0x95   :  { %2291 = vmatpush1.bf16.msra.mxu0 %v3459_v6  ;;  %2334 = vmatpush1.bf16.msra.mxu1 %v3462_v22 }
  0x96   :  { %2292 = vmatprep.subr.bf16.mxu0 %v3467_v23  ;;  %2335 = vmatprep.subr.bf16.mxu1 %v3470_v24 }
  0x99   :  { %2293 = vmatpush1.bf16.msra.mxu0 %v3465_v25  ;;  %2336 = vmatpush1.bf16.msra.mxu1 %v3468_v26 }
  0x9a   :  { %2294 = vmatprep.subr.bf16.mxu0 %v3473_v27  ;;  %2337 = vmatprep.subr.bf16.mxu1 %v3476_v28 }
  0x9d   :  { %2295 = vmatpush1.bf16.msra.mxu0 %v3471_v29  ;;  %2338 = vmatpush1.bf16.msra.mxu1 %v3474_v30 }
  0x9e   :  { %2296 = vmatprep.subr.bf16.mxu0 %v3479_v31  ;;  %2339 = vmatprep.subr.bf16.mxu1 %v3482_v32 }
  0xa1   :  { %2297 = vmatpush1.bf16.msra.mxu0 %v3477_v33  ;;  %2340 = vmatpush1.bf16.msra.mxu1 %v3480_v34 }
  0xa2   :  { %2298 = vmatprep.subr.bf16.mxu0 %v3485_v35  ;;  %2341 = vmatprep.subr.bf16.mxu1 %v3488_v36 }
  0xa5   :  { %2299 = vmatpush2.bf16.msra.mxu0 %v3483_v37  ;;  %2342 = vmatpush2.bf16.msra.mxu1 %v3486_v38 }
  0xa6   :  { %2300 = vmatprep.subr.bf16.mxu0 %v3491_v39  ;;  %2343 = vmatprep.subr.bf16.mxu1 %v3494_v40 }
  0xa9   :  { %2301 = vmatpush2.bf16.msra.mxu0 %v3489_v0  ;;  %2344 = vmatpush2.bf16.msra.mxu1 %v3492_v41  ;;  %v3531_v0 = vld [vmem:[#allocation8 + $0x4e0] ss:$16 sps:$4 sm:$0xff]  }
  0xaa   :  { %2302 = vmatprep.subr.bf16.mxu0 %v3497_v42  ;;  %2345 = vmatprep.subr.bf16.mxu1 %v3500_v43  ;;  %v3534_v43 = vld [vmem:[#allocation8 + $0x6e0] ss:$16 sps:$4 sm:$0xff]  }
  0xad   :  { %2303 = vmatpush2.bf16.msra.mxu0 %v3495_v44  ;;  %2346 = vmatpush2.bf16.msra.mxu1 %v3498_v45  ;;  %v3539_v44 = vld [vmem:[#allocation8 + $0x4c4] ss:$16 sps:$4 sm:$0xff]  }
  0xae   :  { %2304 = vmatprep.subr.bf16.mxu0 %v3503_v46  ;;  %2347 = vmatprep.subr.bf16.mxu1 %v3506_v47  ;;  %v3542_v46 = vld [vmem:[#allocation8 + $0x6c4] ss:$16 sps:$4 sm:$0xff]   ;;  %v3537_v47 = vld [vmem:[#allocation8 + $0x4c0] ss:$16 sps:$4 sm:$0xff]  }
  0xb1   :  { %2305 = vmatpush2.bf16.msra.mxu0 %v3501_v48  ;;  %2348 = vmatpush2.bf16.msra.mxu1 %v3504_v49  ;;  %v3540_v48 = vld [vmem:[#allocation8 + $0x6c0] ss:$16 sps:$4 sm:$0xff]   ;;  %v3545_v49 = vld [vmem:[#allocation8 + $0x4a4] ss:$16 sps:$4 sm:$0xff]  }
  0xb2   :  { %2306 = vmatprep.subr.bf16.mxu0 %v3509_v50  ;;  %2349 = vmatprep.subr.bf16.mxu1 %v3512_v51  ;;  %v3548_v50 = vld [vmem:[#allocation8 + $0x6a4] ss:$16 sps:$4 sm:$0xff]   ;;  %v3543_v51 = vld [vmem:[#allocation8 + $0x4a0] ss:$16 sps:$4 sm:$0xff]  }
  0xb5   :  { %2307 = vmatpush2.bf16.msra.mxu0 %v3507_v52  ;;  %2350 = vmatpush2.bf16.msra.mxu1 %v3510_v53  ;;  %v3546_v52 = vld [vmem:[#allocation8 + $0x6a0] ss:$16 sps:$4 sm:$0xff]   ;;  %v3551_v53 = vld [vmem:[#allocation8 + $0x484] ss:$16 sps:$4 sm:$0xff]  }
  0xb6   :  { %2308 = vmatprep.subr.bf16.mxu0 %v3515_v54  ;;  %2351 = vmatprep.subr.bf16.mxu1 %v3518_v55  ;;  %v3554_v54 = vld [vmem:[#allocation8 + $0x684] ss:$16 sps:$4 sm:$0xff]   ;;  %v3549_v55 = vld [vmem:[#allocation8 + $0x480] ss:$16 sps:$4 sm:$0xff]  }
  0xb9   :  { %2309 = vmatpush2.bf16.msra.mxu0 %v3513_v56  ;;  %2352 = vmatpush2.bf16.msra.mxu1 %v3516_v57  ;;  %v3552_v56 = vld [vmem:[#allocation8 + $0x680] ss:$16 sps:$4 sm:$0xff]   ;;  %v3557_v57 = vld [vmem:[#allocation8 + $0x464] ss:$16 sps:$4 sm:$0xff]  }
  0xba   :  { %2310 = vmatprep.subr.bf16.mxu0 %v3521_v58  ;;  %2353 = vmatprep.subr.bf16.mxu1 %v3524_v59  ;;  %v3560_v58 = vld [vmem:[#allocation8 + $0x664] ss:$16 sps:$4 sm:$0xff]   ;;  %v3555_v59 = vld [vmem:[#allocation8 + $0x460] ss:$16 sps:$4 sm:$0xff]  }
  0xbd   :  { %2311 = vmatpush2.bf16.msra.mxu0 %v3519_v60  ;;  %2354 = vmatpush2.bf16.msra.mxu1 %v3522_v61  ;;  %v184_v60 = vsub.s32 5, %v4067_v7  ;;  %v3558_v61 = vld [vmem:[#allocation8 + $0x660] ss:$16 sps:$4 sm:$0xff]  }
  0xbe   :  { %2312 = vmatprep.subr.bf16.mxu0 %v3527_v62  ;;  %2355 = vmatprep.subr.bf16.mxu1 %v3530_v63  ;;  %v3563_v62 = vld [vmem:[#allocation8 + $0x444] ss:$16 sps:$4 sm:$0xff]   ;;  %v192_v63 = vsub.s32 7, %v4067_v7 }
  0xc1   :  { %2313 = vmatpush2.bf16.msra.mxu0 %v3525_v1  ;;  %2356 = vmatpush2.bf16.msra.mxu1 %v3528_v2  ;;  %v3566_v1 = vld [vmem:[#allocation8 + $0x644] ss:$16 sps:$4 sm:$0xff]   ;;  %v3561_v2 = vld [vmem:[#allocation8 + $0x440] ss:$16 sps:$4 sm:$0xff]  }
  0xc2   :  { %2368 = vmatprep.subr.bf16.mxu0 %v3533_v3  ;;  %2411 = vmatprep.subr.bf16.mxu1 %v3536_v4  ;;  %v185_v3 = vrot.slane %v4072_v11, %v184_v60  ;;  %v3564_v4 = vld [vmem:[#allocation8 + $0x640] ss:$16 sps:$4 sm:$0xff]   ;;  %v180_v60 = vsub.s32 4, %v4067_v7 }
 0x124   :  { %v562_v13 = vpop.f32.mrf.mxu0  ;;  %v605_v14 = vpop.f32.mrf.mxu1 }
 0x125   :  { %v563_v24 = vadd.f32 %v562_v13, %v165_v16  ;;  %v606_v28 = vadd.f32 %v605_v14, %v173_v19  ;;  %v193_v14 = vrot.slane %v4072_v11, %v192_v63  ;;  %v188_v63 = vsub.s32 6, %v4067_v7 }
 0x126   :  { %v564_v17 = vpop.f32.mrf.mxu0  ;;  %v607_v20 = vpop.f32.mrf.mxu1 }
 0x127   :  { %v565_v6 = vadd.f32 %v564_v17, %v169_v15  ;;  %v608_v25 = vadd.f32 %v607_v20, %v177_v18  ;;  %v700_v36 = vmax.f32 %v563_v24, 0.0  ;;  %v702_v39 = vmax.f32 %v606_v28, 0.0  ;;  %v3578_v24 = vld [vmem:[#allocation8 + $0x604] ss:$16 sps:$4 sm:$0xff]  }
 0x128   :  { %v566_v21 = vpop.f32.mrf.mxu0  ;;  %v609_v23 = vpop.f32.mrf.mxu1 }
 0x129   :  { %v567_v22 = vadd.f32 %v566_v21, %v165_v16  ;;  %v610_v26 = vadd.f32 %v609_v23, %v173_v19  ;;  %v701_v33 = vmax.f32 %v565_v6, 0.0  ;;  %v703_v37 = vmax.f32 %v608_v25, 0.0  ;;  %v3570_v21 = vld [vmem:[#allocation8 + $0x620] ss:$16 sps:$4 sm:$0xff]   ;;  %v3575_v6 = vld [vmem:[#allocation8 + $0x404] ss:$16 sps:$4 sm:$0xff]  }
 0x12a   :  { %v568_v27 = vpop.f32.mrf.mxu0  ;;  %v611_v30 = vpop.f32.mrf.mxu1 }
 0x12b   :  { %v569_v29 = vadd.f32 %v568_v27, %v169_v15  ;;  %v708_v31 = vmax.f32 %v567_v22, 0.0  ;;  %v612_v32 = vadd.f32 %v611_v30, %v177_v18  ;;  %v710_v34 = vmax.f32 %v610_v26, 0.0  ;;  %v3572_v15 = vld [vmem:[#allocation8 + $0x624] ss:$16 sps:$4 sm:$0xff]   ;;  %v3567_v18 = vld [vmem:[#allocation8 + $0x420] ss:$16 sps:$4 sm:$0xff]  }
 0x12c   :  { %v3573_v27 = vld [vmem:[#allocation8 + $0x400] ss:$16 sps:$4 sm:$0xff]  }
 0x12d   :  { %v709_v35 = vmax.f32 %v569_v29, 0.0  ;;  %v711_v38 = vmax.f32 %v612_v32, 0.0  ;;  %v4089_v41 = vpack.c.bf16 %v708_v31, %v700_v36  ;;  %v4093_v45 = vpack.c.bf16 %v710_v34, %v702_v39  ;;  %v3576_v31 = vld [vmem:[#allocation8 + $0x600] ss:$16 sps:$4 sm:$0xff]   ;;  %v3581_v32 = vld [vmem:[#allocation8 + $0x5e4] ss:$16 sps:$4 sm:$0xff]  }
 0x12f   :  { %v4087_v40 = vpack.c.bf16 %v709_v35, %v701_v33  ;;  %v4091_v42 = vpack.c.bf16 %v711_v38, %v703_v37  ;;  %v3584_v35 = vld [vmem:[#allocation8 + $0x7e4] ss:$16 sps:$4 sm:$0xff]   ;;  %v3579_v38 = vld [vmem:[#allocation8 + $0x5e0] ss:$16 sps:$4 sm:$0xff]  }
 0x131   :  { %2314 = vmatprep.mubr.bf16.mxu0 %v4087_v40  ;;  %2357 = vmatprep.mubr.bf16.mxu1 %v4091_v42 }
 0x132   :  { %2315 = vmatmul.mubr.bf16.vlgmr.msra.gmra.mxu0 %v4089_v41  ;;  %2358 = vmatmul.mubr.bf16.vlgmr.msra.gmra.mxu1 %v4093_v45 }
 0x133   :  { %2369 = vmatpush1.bf16.msra.mxu0 %v3531_v0  ;;  %2412 = vmatpush1.bf16.msra.mxu1 %v3534_v43  ;;  %v3582_v0 = vld [vmem:[#allocation8 + $0x7e0] ss:$16 sps:$4 sm:$0xff]   ;;  %v3587_v43 = vld [vmem:[#allocation8 + $0x5c4] ss:$16 sps:$4 sm:$0xff]  }
 0x134   :  { %2370 = vmatprep.subr.bf16.mxu0 %v3539_v44  ;;  %2413 = vmatprep.subr.bf16.mxu1 %v3542_v46  ;;  %v3590_v46 = vld [vmem:[#allocation8 + $0x7c4] ss:$16 sps:$4 sm:$0xff]  }
 0x137   :  { %2371 = vmatpush1.bf16.msra.mxu0 %v3537_v47  ;;  %2414 = vmatpush1.bf16.msra.mxu1 %v3540_v48  ;;  %v3585_v47 = vld [vmem:[#allocation8 + $0x5c0] ss:$16 sps:$4 sm:$0xff]  }
 0x138   :  { %2372 = vmatprep.subr.bf16.mxu0 %v3545_v49  ;;  %2415 = vmatprep.subr.bf16.mxu1 %v3548_v50  ;;  %v3588_v48 = vld [vmem:[#allocation8 + $0x7c0] ss:$16 sps:$4 sm:$0xff]   ;;  %v3593_v49 = vld [vmem:[#allocation8 + $0x5a4] ss:$16 sps:$4 sm:$0xff]  }
 0x139   :  { %v3596_v50 = vld [vmem:[#allocation8 + $0x7a4] ss:$16 sps:$4 sm:$0xff]  }
 0x13b   :  { %2373 = vmatpush1.bf16.msra.mxu0 %v3543_v51  ;;  %2416 = vmatpush1.bf16.msra.mxu1 %v3546_v52  ;;  %v3591_v51 = vld [vmem:[#allocation8 + $0x5a0] ss:$16 sps:$4 sm:$0xff]  }
 0x13c   :  { %2374 = vmatprep.subr.bf16.mxu0 %v3551_v53  ;;  %2417 = vmatprep.subr.bf16.mxu1 %v3554_v54  ;;  %v3594_v52 = vld [vmem:[#allocation8 + $0x7a0] ss:$16 sps:$4 sm:$0xff]   ;;  %v3599_v53 = vld [vmem:[#allocation8 + $0x584] ss:$16 sps:$4 sm:$0xff]  }
 0x13d   :  { %v3602_v54 = vld [vmem:[#allocation8 + $0x784] ss:$16 sps:$4 sm:$0xff]  }
 0x13f   :  { %2375 = vmatpush1.bf16.msra.mxu0 %v3549_v55  ;;  %2418 = vmatpush1.bf16.msra.mxu1 %v3552_v56  ;;  %v3597_v55 = vld [vmem:[#allocation8 + $0x580] ss:$16 sps:$4 sm:$0xff]  }
 0x140   :  { %2376 = vmatprep.subr.bf16.mxu0 %v3557_v57  ;;  %2419 = vmatprep.subr.bf16.mxu1 %v3560_v58  ;;  %v3600_v56 = vld [vmem:[#allocation8 + $0x780] ss:$16 sps:$4 sm:$0xff]   ;;  %v3605_v57 = vld [vmem:[#allocation8 + $0x564] ss:$16 sps:$4 sm:$0xff]  }
 0x141   :  { %v3608_v58 = vld [vmem:[#allocation8 + $0x764] ss:$16 sps:$4 sm:$0xff]  }
 0x143   :  { %2377 = vmatpush1.bf16.msra.mxu0 %v3555_v59  ;;  %2420 = vmatpush1.bf16.msra.mxu1 %v3558_v61  ;;  %v3603_v59 = vld [vmem:[#allocation8 + $0x560] ss:$16 sps:$4 sm:$0xff]  }
 0x144   :  { %2378 = vmatprep.subr.bf16.mxu0 %v3563_v62  ;;  %v4102_v13 = vpop.f32.mrf.mxu0  ;;  %2421 = vmatprep.subr.bf16.mxu1 %v3566_v1  ;;  %v4105_v16 = vpop.f32.mrf.mxu1  ;;  %v3606_v61 = vld [vmem:[#allocation8 + $0x760] ss:$16 sps:$4 sm:$0xff]   ;;  %v3611_v62 = vld [vmem:[#allocation8 + $0x544] ss:$16 sps:$4 sm:$0xff]  }
 0x145   :  { %v3614_v1 = vld [vmem:[#allocation8 + $0x744] ss:$16 sps:$4 sm:$0xff]  }
 0x146   :  { %v650_v17 = vpop.f32.mrf.mxu0  ;;  %v693_v20 = vpop.f32.mrf.mxu1 }
 0x147   :  { %2379 = vmatpush1.bf16.msra.mxu0 %v3561_v2  ;;  %v651_v19 = vadd.f32 %v650_v17, %v185_v3  ;;  %2422 = vmatpush1.bf16.msra.mxu1 %v3564_v4  ;;  %v694_v23 = vadd.f32 %v693_v20, %v193_v14  ;;  %v3609_v2 = vld [vmem:[#allocation8 + $0x540] ss:$16 sps:$4 sm:$0xff]  }
 0x148   :  { %2380 = vmatprep.subr.bf16.mxu0 %v3569_v5  ;;  %v4107_v22 = vpop.f32.mrf.mxu0  ;;  %2423 = vmatprep.subr.bf16.mxu1 %v3572_v15  ;;  %v4109_v25 = vpop.f32.mrf.mxu1  ;;  %v3612_v4 = vld [vmem:[#allocation8 + $0x740] ss:$16 sps:$4 sm:$0xff]   ;;  %v3617_v5 = vld [vmem:[#allocation8 + $0x524] ss:$16 sps:$4 sm:$0xff]  }
 0x149   :  { %v705_v28 = vmax.f32 %v651_v19, 0.0  ;;  %v707_v33 = vmax.f32 %v694_v23, 0.0  ;;  %v3620_v15 = vld [vmem:[#allocation8 + $0x724] ss:$16 sps:$4 sm:$0xff]   ;;  %v3615_v17 = vld [vmem:[#allocation8 + $0x520] ss:$16 sps:$4 sm:$0xff]  }
 0x14a   :  { %v654_v26 = vpop.f32.mrf.mxu0  ;;  %v697_v30 = vpop.f32.mrf.mxu1  ;;  %v3618_v20 = vld [vmem:[#allocation8 + $0x720] ss:$16 sps:$4 sm:$0xff]  }
 0x14b   :  { %2381 = vmatpush1.bf16.msra.mxu0 %v3567_v18  ;;  %v655_v29 = vadd.f32 %v654_v26, %v185_v3  ;;  %2424 = vmatpush1.bf16.msra.mxu1 %v3570_v21  ;;  %v698_v34 = vadd.f32 %v697_v30, %v193_v14  ;;  %v181_v3 = vrot.slane %v4072_v11, %v180_v60  ;;  %v3623_v21 = vld [vmem:[#allocation8 + $0x504] ss:$16 sps:$4 sm:$0xff]   ;;  %v3632_v30 = vld [vmem:[#allocation8 + $0x2ec] ss:$16 sps:$4 sm:$0xff]  }
 0x14c   :  { %2382 = vmatprep.subr.bf16.mxu0 %v3575_v6  ;;  %2425 = vmatprep.subr.bf16.mxu1 %v3578_v24  ;;  %v189_v14 = vrot.slane %v4072_v11, %v188_v63  ;;  %v3626_v24 = vld [vmem:[#allocation8 + $0x704] ss:$16 sps:$4 sm:$0xff]   ;;  %v3621_v11 = vld [vmem:[#allocation8 + $0x500] ss:$16 sps:$4 sm:$0xff]   ;;  %v3671_v60 = vld [vmem:[#allocation8 + $0xc] ss:$16 sps:$4 sm:$0xff]  }
 0x14d   :  { %v713_v36 = vmax.f32 %v655_v29, 0.0  ;;  %v715_v37 = vmax.f32 %v698_v34, 0.0  ;;  %v649_v18 = vadd.f32 %v4102_v13, %v181_v3  ;;  %v653_v19 = vadd.f32 %v4107_v22, %v181_v3  ;;  %v3629_v13 = vld [vmem:[#allocation8 + $0xec] ss:$16 sps:$4 sm:$0xff]   ;;  %v3672_v63 = vld [vmem:[#allocation8 + $0x208] ss:$16 sps:$4 sm:$0xff]  }
 0x14e   :  { %v692_v6 = vadd.f32 %v4105_v16, %v189_v14  ;;  %v696_v23 = vadd.f32 %v4109_v25, %v189_v14  ;;  %v3630_v16 = vld [vmem:[#allocation8 + $0x2e8] ss:$16 sps:$4 sm:$0xff]   ;;  %v3638_v34 = vld [vmem:[#allocation8 + $0x2cc] ss:$16 sps:$4 sm:$0xff]  }
 0x14f   :  { %2383 = vmatpush1.bf16.msra.mxu0 %v3573_v27  ;;  %v4111_v39 = vpack.c.bf16 %v713_v36, %v705_v28  ;;  %2426 = vmatpush1.bf16.msra.mxu1 %v3576_v31  ;;  %v4113_v44 = vpack.c.bf16 %v715_v37, %v707_v33  ;;  %v704_v26 = vmax.f32 %v649_v18, 0.0  ;;  %v712_v27 = vmax.f32 %v653_v19, 0.0  ;;  %v3624_v28 = vld [vmem:[#allocation8 + $0x700] ss:$16 sps:$4 sm:$0xff]   ;;  %v3627_v31 = vld [vmem:[#allocation8 + $0xe8] ss:$16 sps:$4 sm:$0xff]  }
 0x150   :  { %2384 = vmatprep.subr.bf16.mxu0 %v3581_v32  ;;  %2427 = vmatprep.subr.bf16.mxu1 %v3584_v35  ;;  %v706_v29 = vmax.f32 %v692_v6, 0.0  ;;  %v714_v22 = vmax.f32 %v696_v23, 0.0  ;;  %v3635_v33 = vld [vmem:[#allocation8 + $0xcc] ss:$16 sps:$4 sm:$0xff]   ;;  %v3633_v35 = vld [vmem:[#allocation8 + $0xc8] ss:$16 sps:$4 sm:$0xff]  }
 0x151   :  { %2400 = vmatprep.mubr.bf16.mxu0 %v4111_v39  ;;  %2443 = vmatprep.mubr.bf16.mxu1 %v4113_v44  ;;  %v4125_v32 = vpack.c.bf16 %v712_v27, %v704_v26  ;;  %v3636_v36 = vld [vmem:[#allocation8 + $0x2c8] ss:$16 sps:$4 sm:$0xff]   ;;  %v3641_v37 = vld [vmem:[#allocation8 + $0xac] ss:$16 sps:$4 sm:$0xff]  }
 0x152   :  { %v4127_v25 = vpack.c.bf16 %v714_v22, %v706_v29  ;;  %v3675_v3 = vld [vmem:[#allocation8 + $0x1e8] ss:$16 sps:$4 sm:$0xff]   ;;  %v3686_v14 = vld [vmem:[#allocation8 + $0x3cc] ss:$16 sps:$4 sm:$0xff]  }
 0x153   :  { %2385 = vmatpush2.bf16.msra.mxu0 %v3579_v38  ;;  %2428 = vmatpush2.bf16.msra.mxu1 %v3582_v0  ;;  %v3644_v38 = vld [vmem:[#allocation8 + $0x2ac] ss:$16 sps:$4 sm:$0xff]   ;;  %v3639_v0 = vld [vmem:[#allocation8 + $0xa8] ss:$16 sps:$4 sm:$0xff]  }
 0x154   :  { %2386 = vmatprep.subr.bf16.mxu0 %v3587_v43  ;;  %2429 = vmatprep.subr.bf16.mxu1 %v3590_v46  ;;  %v3642_v43 = vld [vmem:[#allocation8 + $0x2a8] ss:$16 sps:$4 sm:$0xff]   ;;  %v3647_v46 = vld [vmem:[#allocation8 + $0x8c] ss:$16 sps:$4 sm:$0xff]  }
 0x155   :  { %v3689_v18 = vld [vmem:[#allocation8 + $0x1ac] ss:$16 sps:$4 sm:$0xff]  }
 0x156   :  { %v3692_v19 = vld [vmem:[#allocation8 + $0x3ac] ss:$16 sps:$4 sm:$0xff]  }
 0x157   :  { %2387 = vmatpush2.bf16.msra.mxu0 %v3585_v47  ;;  %2430 = vmatpush2.bf16.msra.mxu1 %v3588_v48  ;;  %v3650_v47 = vld [vmem:[#allocation8 + $0x28c] ss:$16 sps:$4 sm:$0xff]   ;;  %v3645_v48 = vld [vmem:[#allocation8 + $0x88] ss:$16 sps:$4 sm:$0xff]  }
 0x158   :  { %2388 = vmatprep.subr.bf16.mxu0 %v3593_v49  ;;  %2431 = vmatprep.subr.bf16.mxu1 %v3596_v50  ;;  %v3653_v49 = vld [vmem:[#allocation8 + $0x6c] ss:$16 sps:$4 sm:$0xff]  }
 0x159   :  { %v3656_v50 = vld [vmem:[#allocation8 + $0x26c] ss:$16 sps:$4 sm:$0xff]  }
 0x15a   :  { %v3695_v6 = vld [vmem:[#allocation8 + $0x18c] ss:$16 sps:$4 sm:$0xff]  }
 0x15b   :  { %2389 = vmatpush2.bf16.msra.mxu0 %v3591_v51  ;;  %2432 = vmatpush2.bf16.msra.mxu1 %v3594_v52  ;;  %v3654_v51 = vld [vmem:[#allocation8 + $0x268] ss:$16 sps:$4 sm:$0xff]   ;;  %v3659_v52 = vld [vmem:[#allocation8 + $0x4c] ss:$16 sps:$4 sm:$0xff]  }
 0x15c   :  { %2390 = vmatprep.subr.bf16.mxu0 %v3599_v53  ;;  %2433 = vmatprep.subr.bf16.mxu1 %v3602_v54  ;;  %v3662_v53 = vld [vmem:[#allocation8 + $0x24c] ss:$16 sps:$4 sm:$0xff]   ;;  %v3657_v54 = vld [vmem:[#allocation8 + $0x48] ss:$16 sps:$4 sm:$0xff]  }
 0x15d   :  { %v3698_v23 = vld [vmem:[#allocation8 + $0x38c] ss:$16 sps:$4 sm:$0xff]  }
 0x15e   :  { %v3701_v26 = vld [vmem:[#allocation8 + $0x16c] ss:$16 sps:$4 sm:$0xff]  }
 0x15f   :  { %2391 = vmatpush2.bf16.msra.mxu0 %v3597_v55  ;;  %2434 = vmatpush2.bf16.msra.mxu1 %v3600_v56  ;;  %v3660_v55 = vld [vmem:[#allocation8 + $0x248] ss:$16 sps:$4 sm:$0xff]   ;;  %v3665_v56 = vld [vmem:[#allocation8 + $0x2c] ss:$16 sps:$4 sm:$0xff]  }
 0x160   :  { %2392 = vmatprep.subr.bf16.mxu0 %v3605_v57  ;;  %2435 = vmatprep.subr.bf16.mxu1 %v3608_v58  ;;  %v3668_v57 = vld [vmem:[#allocation8 + $0x22c] ss:$16 sps:$4 sm:$0xff]   ;;  %v3663_v58 = vld [vmem:[#allocation8 + $0x28] ss:$16 sps:$4 sm:$0xff]  }
 0x161   :  { %v3704_v27 = vld [vmem:[#allocation8 + $0x36c] ss:$16 sps:$4 sm:$0xff]  }
 0x162   :  { %v3707_v29 = vld [vmem:[#allocation8 + $0x14c] ss:$16 sps:$4 sm:$0xff]  }
 0x163   :  { %2393 = vmatpush2.bf16.msra.mxu0 %v3603_v59  ;;  %2436 = vmatpush2.bf16.msra.mxu1 %v3606_v61  ;;  %v3666_v59 = vld [vmem:[#allocation8 + $0x228] ss:$16 sps:$4 sm:$0xff]   ;;  %v3674_v61 = vld [vmem:[#allocation8 + $0x20c] ss:$16 sps:$4 sm:$0xff]  }
 0x164   :  { %2394 = vmatprep.subr.bf16.mxu0 %v3611_v62  ;;  %2437 = vmatprep.subr.bf16.mxu1 %v3614_v1  ;;  %v3669_v62 = vld [vmem:[#allocation8 + $0x8] ss:$16 sps:$4 sm:$0xff]   ;;  %v3677_v1 = vld [vmem:[#allocation8 + $0x1ec] ss:$16 sps:$4 sm:$0xff]  }
 0x165   :  { %v3710_v22 = vld [vmem:[#allocation8 + $0x34c] ss:$16 sps:$4 sm:$0xff]  }
 0x167   :  { %2395 = vmatpush2.bf16.msra.mxu0 %v3609_v2  ;;  %2438 = vmatpush2.bf16.msra.mxu1 %v3612_v4  ;;  %v3680_v2 = vld [vmem:[#allocation8 + $0x3ec] ss:$16 sps:$4 sm:$0xff]   ;;  %v3678_v4 = vld [vmem:[#allocation8 + $0x3e8] ss:$16 sps:$4 sm:$0xff]  }
 0x168   :  { %2396 = vmatprep.subr.bf16.mxu0 %v3617_v5  ;;  %2439 = vmatprep.subr.bf16.mxu1 %v3620_v15  ;;  %v3683_v5 = vld [vmem:[#allocation8 + $0x1cc] ss:$16 sps:$4 sm:$0xff]   ;;  %v3681_v15 = vld [vmem:[#allocation8 + $0x1c8] ss:$16 sps:$4 sm:$0xff]  }
 0x16b   :  { %2397 = vmatpush2.bf16.msra.mxu0 %v3615_v17  ;;  %2440 = vmatpush2.bf16.msra.mxu1 %v3618_v20  ;;  %v3684_v17 = vld [vmem:[#allocation8 + $0x3c8] ss:$16 sps:$4 sm:$0xff]  }
 0x16c   :  { %2398 = vmatprep.subr.bf16.mxu0 %v3623_v21  ;;  %2441 = vmatprep.subr.bf16.mxu1 %v3626_v24  ;;  %v3687_v20 = vld [vmem:[#allocation8 + $0x1a8] ss:$16 sps:$4 sm:$0xff]  }
 0x16d   :  { %v3690_v21 = vld [vmem:[#allocation8 + $0x3a8] ss:$16 sps:$4 sm:$0xff]  }
 0x16e   :  { %v3693_v24 = vld [vmem:[#allocation8 + $0x188] ss:$16 sps:$4 sm:$0xff]  }
 0x16f   :  { %2399 = vmatpush2.bf16.msra.mxu0 %v3621_v11  ;;  %2442 = vmatpush2.bf16.msra.mxu1 %v3624_v28  ;;  %v3696_v11 = vld [vmem:[#allocation8 + $0x388] ss:$16 sps:$4 sm:$0xff]  }
 0x170   :  { %2454 = vmatprep.subr.bf16.mxu0 %v3629_v13  ;;  %2497 = vmatprep.subr.bf16.mxu1 %v3632_v30  ;;  %v3699_v28 = vld [vmem:[#allocation8 + $0x168] ss:$16 sps:$4 sm:$0xff]  }
 0x171   :  { %v3702_v13 = vld [vmem:[#allocation8 + $0x368] ss:$16 sps:$4 sm:$0xff]  }
 0x172   :  { %2401 = vmatmul.mubr.bf16.vlgmr.msra.gmra.mxu0 %v4125_v32  ;;  %2444 = vmatmul.mubr.bf16.vlgmr.msra.gmra.mxu1 %v4127_v25  ;;  %v3705_v30 = vld [vmem:[#allocation8 + $0x148] ss:$16 sps:$4 sm:$0xff]  }
 0x173   :  { %2455 = vmatpush1.bf16.msra.mxu0 %v3627_v31  ;;  %2486 = vmatprep.mubr.bf16.mxu0 %v4087_v40  ;;  %v3648_v40 = vld [vmem:[#allocation8 + $0x288] ss:$16 sps:$4 sm:$0xff]  }
 0x174   :  { %2498 = vmatpush1.bf16.msra.mxu1 %v3630_v16  ;;  %2529 = vmatprep.mubr.bf16.mxu1 %v4091_v42  ;;  %v3651_v42 = vld [vmem:[#allocation8 + $0x68] ss:$16 sps:$4 sm:$0xff]   ;;  %v3713_v16 = vld [vmem:[#allocation8 + $0x12c] ss:$16 sps:$4 sm:$0xff]  }
 0x175   :  { %2456 = vmatprep.subr.bf16.mxu0 %v3635_v33  ;;  %2499 = vmatprep.subr.bf16.mxu1 %v3638_v34  ;;  %v3708_v31 = vld [vmem:[#allocation8 + $0x348] ss:$16 sps:$4 sm:$0xff]   ;;  %v3716_v33 = vld [vmem:[#allocation8 + $0x32c] ss:$16 sps:$4 sm:$0xff]  }
 0x176   :  { %v3711_v34 = vld [vmem:[#allocation8 + $0x128] ss:$16 sps:$4 sm:$0xff]  }
 0x177   :  { %2457 = vmatpush1.bf16.msra.mxu0 %v3633_v35  ;;  %v3714_v35 = vld [vmem:[#allocation8 + $0x328] ss:$16 sps:$4 sm:$0xff]  }
 0x178   :  { %2500 = vmatpush1.bf16.msra.mxu1 %v3636_v36  ;;  %2458 = vmatprep.subr.bf16.mxu0 %v3641_v37  ;;  %v3719_v36 = vld [vmem:[#allocation8 + $0x10c] ss:$16 sps:$4 sm:$0xff]  }
 0x179   :  { %2501 = vmatprep.subr.bf16.mxu1 %v3644_v38  ;;  %v3722_v37 = vld [vmem:[#allocation8 + $0x30c] ss:$16 sps:$4 sm:$0xff]   ;;  %v3717_v38 = vld [vmem:[#allocation8 + $0x108] ss:$16 sps:$4 sm:$0xff]  }
 0x17b   :  { %2459 = vmatpush1.bf16.msra.mxu0 %v3639_v0  ;;  %v3720_v0 = vld [vmem:[#allocation8 + $0x308] ss:$16 sps:$4 sm:$0xff]  }
 0x17c   :  { %2502 = vmatpush1.bf16.msra.mxu1 %v3642_v43  ;;  %2460 = vmatprep.subr.bf16.mxu0 %v3647_v46  ;;  %v3725_v43 = vld [vmem:[#allocation8 + $0x4ec] ss:$16 sps:$4 sm:$0xff]  }
 0x17d   :  { %2503 = vmatprep.subr.bf16.mxu1 %v3650_v47  ;;  %v3728_v46 = vld [vmem:[#allocation8 + $0x6ec] ss:$16 sps:$4 sm:$0xff]   ;;  %v3723_v47 = vld [vmem:[#allocation8 + $0x4e8] ss:$16 sps:$4 sm:$0xff]  }
 0x17f   :  { %2461 = vmatpush1.bf16.msra.mxu0 %v3645_v48  ;;  %v3726_v48 = vld [vmem:[#allocation8 + $0x6e8] ss:$16 sps:$4 sm:$0xff]  }
 0x180   :  { %2504 = vmatpush1.bf16.msra.mxu1 %v3648_v40  ;;  %2462 = vmatprep.subr.bf16.mxu0 %v3653_v49  ;;  %v3731_v40 = vld [vmem:[#allocation8 + $0x4cc] ss:$16 sps:$4 sm:$0xff]  }
 0x181   :  { %2505 = vmatprep.subr.bf16.mxu1 %v3656_v50  ;;  %v3734_v49 = vld [vmem:[#allocation8 + $0x6cc] ss:$16 sps:$4 sm:$0xff]   ;;  %v3729_v50 = vld [vmem:[#allocation8 + $0x4c8] ss:$16 sps:$4 sm:$0xff]  }
 0x183   :  { %2463 = vmatpush1.bf16.msra.mxu0 %v3651_v42  ;;  %v3732_v42 = vld [vmem:[#allocation8 + $0x6c8] ss:$16 sps:$4 sm:$0xff]  }
 0x184   :  { %2506 = vmatpush1.bf16.msra.mxu1 %v3654_v51  ;;  %2464 = vmatprep.subr.bf16.mxu0 %v3659_v52  ;;  %v3737_v51 = vld [vmem:[#allocation8 + $0x4ac] ss:$16 sps:$4 sm:$0xff]  }
 0x185   :  { %2507 = vmatprep.subr.bf16.mxu1 %v3662_v53  ;;  %v3740_v52 = vld [vmem:[#allocation8 + $0x6ac] ss:$16 sps:$4 sm:$0xff]   ;;  %v3735_v53 = vld [vmem:[#allocation8 + $0x4a8] ss:$16 sps:$4 sm:$0xff]  }
 0x187   :  { %2465 = vmatpush1.bf16.msra.mxu0 %v3657_v54  ;;  %v3743_v54 = vld [vmem:[#allocation8 + $0x48c] ss:$16 sps:$4 sm:$0xff]  }
 0x188   :  { %2508 = vmatpush1.bf16.msra.mxu1 %v3660_v55  ;;  %2466 = vmatprep.subr.bf16.mxu0 %v3665_v56  ;;  %v3741_v55 = vld [vmem:[#allocation8 + $0x488] ss:$16 sps:$4 sm:$0xff]   ;;  %v3749_v56 = vld [vmem:[#allocation8 + $0x46c] ss:$16 sps:$4 sm:$0xff]  }
 0x189   :  { %2509 = vmatprep.subr.bf16.mxu1 %v3668_v57  ;;  %v3752_v57 = vld [vmem:[#allocation8 + $0x66c] ss:$16 sps:$4 sm:$0xff]  }
 0x18b   :  { %2467 = vmatpush1.bf16.msra.mxu0 %v3663_v58  ;;  %v3750_v58 = vld [vmem:[#allocation8 + $0x668] ss:$16 sps:$4 sm:$0xff]  }
 0x18c   :  { %2510 = vmatpush1.bf16.msra.mxu1 %v3666_v59  ;;  %2468 = vmatprep.subr.bf16.mxu0 %v3671_v60  ;;  %v3755_v59 = vld [vmem:[#allocation8 + $0x44c] ss:$16 sps:$4 sm:$0xff]  }
 0x18d   :  { %2511 = vmatprep.subr.bf16.mxu1 %v3674_v61  ;;  %v3758_v60 = vld [vmem:[#allocation8 + $0x64c] ss:$16 sps:$4 sm:$0xff]   ;;  %v3753_v61 = vld [vmem:[#allocation8 + $0x448] ss:$16 sps:$4 sm:$0xff]  }
 0x18f   :  { %2469 = vmatpush1.bf16.msra.mxu0 %v3669_v62  ;;  %v3756_v62 = vld [vmem:[#allocation8 + $0x648] ss:$16 sps:$4 sm:$0xff]  }
 0x190   :  { %2512 = vmatpush1.bf16.msra.mxu1 %v3672_v63  ;;  %2470 = vmatprep.subr.bf16.mxu0 %v3677_v1  ;;  %v3761_v63 = vld [vmem:[#allocation8 + $0x42c] ss:$16 sps:$4 sm:$0xff]  }
 0x191   :  { %2513 = vmatprep.subr.bf16.mxu1 %v3680_v2  ;;  %v3764_v1 = vld [vmem:[#allocation8 + $0x62c] ss:$16 sps:$4 sm:$0xff]   ;;  %v3759_v2 = vld [vmem:[#allocation8 + $0x428] ss:$16 sps:$4 sm:$0xff]  }
 0x193   :  { %2471 = vmatpush2.bf16.msra.mxu0 %v3675_v3  ;;  %v3762_v3 = vld [vmem:[#allocation8 + $0x628] ss:$16 sps:$4 sm:$0xff]  }
 0x194   :  { %2514 = vmatpush2.bf16.msra.mxu1 %v3678_v4  ;;  %2472 = vmatprep.subr.bf16.mxu0 %v3683_v5  ;;  %v3767_v4 = vld [vmem:[#allocation8 + $0x40c] ss:$16 sps:$4 sm:$0xff]  }
 0x195   :  { %2515 = vmatprep.subr.bf16.mxu1 %v3686_v14  ;;  %v3770_v5 = vld [vmem:[#allocation8 + $0x60c] ss:$16 sps:$4 sm:$0xff]   ;;  %v3765_v14 = vld [vmem:[#allocation8 + $0x408] ss:$16 sps:$4 sm:$0xff]  }
 0x197   :  { %2473 = vmatpush2.bf16.msra.mxu0 %v3681_v15  ;;  %v3768_v15 = vld [vmem:[#allocation8 + $0x608] ss:$16 sps:$4 sm:$0xff]  }
 0x198   :  { %2516 = vmatpush2.bf16.msra.mxu1 %v3684_v17  ;;  %2474 = vmatprep.subr.bf16.mxu0 %v3689_v18  ;;  %v3773_v17 = vld [vmem:[#allocation8 + $0x5ec] ss:$16 sps:$4 sm:$0xff]  }
 0x199   :  { %2517 = vmatprep.subr.bf16.mxu1 %v3692_v19  ;;  %v3776_v18 = vld [vmem:[#allocation8 + $0x7ec] ss:$16 sps:$4 sm:$0xff]   ;;  %v3771_v19 = vld [vmem:[#allocation8 + $0x5e8] ss:$16 sps:$4 sm:$0xff]  }
 0x19b   :  { %2475 = vmatpush2.bf16.msra.mxu0 %v3687_v20  ;;  %v3774_v20 = vld [vmem:[#allocation8 + $0x7e8] ss:$16 sps:$4 sm:$0xff]  }
 0x19c   :  { %2518 = vmatpush2.bf16.msra.mxu1 %v3690_v21  ;;  %2476 = vmatprep.subr.bf16.mxu0 %v3695_v6  ;;  %v3779_v21 = vld [vmem:[#allocation8 + $0x5cc] ss:$16 sps:$4 sm:$0xff]  }
 0x19d   :  { %2519 = vmatprep.subr.bf16.mxu1 %v3698_v23  ;;  %v3782_v6 = vld [vmem:[#allocation8 + $0x7cc] ss:$16 sps:$4 sm:$0xff]   ;;  %v3777_v23 = vld [vmem:[#allocation8 + $0x5c8] ss:$16 sps:$4 sm:$0xff]  }
 0x19f   :  { %2477 = vmatpush2.bf16.msra.mxu0 %v3693_v24  ;;  %v3780_v24 = vld [vmem:[#allocation8 + $0x7c8] ss:$16 sps:$4 sm:$0xff]  }
 0x1a0   :  { %2520 = vmatpush2.bf16.msra.mxu1 %v3696_v11  ;;  %2478 = vmatprep.subr.bf16.mxu0 %v3701_v26  ;;  %v3785_v11 = vld [vmem:[#allocation8 + $0x5ac] ss:$16 sps:$4 sm:$0xff]  }
 0x1a1   :  { %2521 = vmatprep.subr.bf16.mxu1 %v3704_v27  ;;  %v3788_v26 = vld [vmem:[#allocation8 + $0x7ac] ss:$16 sps:$4 sm:$0xff]   ;;  %v3783_v27 = vld [vmem:[#allocation8 + $0x5a8] ss:$16 sps:$4 sm:$0xff]  }
 0x1a3   :  { %2479 = vmatpush2.bf16.msra.mxu0 %v3699_v28  ;;  %v3786_v28 = vld [vmem:[#allocation8 + $0x7a8] ss:$16 sps:$4 sm:$0xff]  }
 0x1a4   :  { %2522 = vmatpush2.bf16.msra.mxu1 %v3702_v13  ;;  %2480 = vmatprep.subr.bf16.mxu0 %v3707_v29  ;;  %v3791_v13 = vld [vmem:[#allocation8 + $0x58c] ss:$16 sps:$4 sm:$0xff]  }
 0x1a5   :  { %2523 = vmatprep.subr.bf16.mxu1 %v3710_v22  ;;  %v3794_v29 = vld [vmem:[#allocation8 + $0x78c] ss:$16 sps:$4 sm:$0xff]   ;;  %v3789_v22 = vld [vmem:[#allocation8 + $0x588] ss:$16 sps:$4 sm:$0xff]  }
 0x1a7   :  { %2481 = vmatpush2.bf16.msra.mxu0 %v3705_v30  ;;  %v3792_v30 = vld [vmem:[#allocation8 + $0x788] ss:$16 sps:$4 sm:$0xff]  }
 0x1a8   :  { %2524 = vmatpush2.bf16.msra.mxu1 %v3708_v31  ;;  %2482 = vmatprep.subr.bf16.mxu0 %v3713_v16  ;;  %v3797_v31 = vld [vmem:[#allocation8 + $0x56c] ss:$16 sps:$4 sm:$0xff]  }
 0x1a9   :  { %2525 = vmatprep.subr.bf16.mxu1 %v3716_v33  ;;  %v3800_v16 = vld [vmem:[#allocation8 + $0x76c] ss:$16 sps:$4 sm:$0xff]   ;;  %v3795_v33 = vld [vmem:[#allocation8 + $0x568] ss:$16 sps:$4 sm:$0xff]  }
 0x1ab   :  { %2483 = vmatpush2.bf16.msra.mxu0 %v3711_v34  ;;  %v3798_v34 = vld [vmem:[#allocation8 + $0x768] ss:$16 sps:$4 sm:$0xff]  }
 0x1ac   :  { %2526 = vmatpush2.bf16.msra.mxu1 %v3714_v35  ;;  %2484 = vmatprep.subr.bf16.mxu0 %v3719_v36  ;;  %v3803_v35 = vld [vmem:[#allocation8 + $0x54c] ss:$16 sps:$4 sm:$0xff]  }
 0x1ad   :  { %2527 = vmatprep.subr.bf16.mxu1 %v3722_v37  ;;  %v3806_v36 = vld [vmem:[#allocation8 + $0x74c] ss:$16 sps:$4 sm:$0xff]   ;;  %v3801_v37 = vld [vmem:[#allocation8 + $0x548] ss:$16 sps:$4 sm:$0xff]  }
 0x1af   :  { %2485 = vmatpush2.bf16.msra.mxu0 %v3717_v38  ;;  %v3804_v38 = vld [vmem:[#allocation8 + $0x748] ss:$16 sps:$4 sm:$0xff]  }
 0x1b0   :  { %2528 = vmatpush2.bf16.msra.mxu1 %v3720_v0  ;;  %2540 = vmatprep.subr.bf16.mxu0 %v3725_v43  ;;  %v3809_v0 = vld [vmem:[#allocation8 + $0x52c] ss:$16 sps:$4 sm:$0xff]  }
 0x1b1   :  { %2583 = vmatprep.subr.bf16.mxu1 %v3728_v46  ;;  %v3812_v43 = vld [vmem:[#allocation8 + $0x72c] ss:$16 sps:$4 sm:$0xff]   ;;  %v3807_v46 = vld [vmem:[#allocation8 + $0x528] ss:$16 sps:$4 sm:$0xff]  }
 0x1b2   :  { %2487 = vmatmul.mubr.bf16.vlgmr.msra.gmra.mxu0 %v4089_v41  ;;  %v3738_v41 = vld [vmem:[#allocation8 + $0x6a8] ss:$16 sps:$4 sm:$0xff]  }
 0x1b3   :  { %2530 = vmatmul.mubr.bf16.vlgmr.msra.gmra.mxu1 %v4093_v45  ;;  %2541 = vmatpush1.bf16.msra.mxu0 %v3723_v47  ;;  %v3746_v45 = vld [vmem:[#allocation8 + $0x68c] ss:$16 sps:$4 sm:$0xff]   ;;  %v3810_v47 = vld [vmem:[#allocation8 + $0x728] ss:$16 sps:$4 sm:$0xff]  }
 0x1b4   :  { %2572 = vmatprep.mubr.bf16.mxu0 %v4111_v39  ;;  %2584 = vmatpush1.bf16.msra.mxu1 %v3726_v48  ;;  %v3744_v39 = vld [vmem:[#allocation8 + $0x688] ss:$16 sps:$4 sm:$0xff]   ;;  %v3815_v48 = vld [vmem:[#allocation8 + $0x50c] ss:$16 sps:$4 sm:$0xff]  }
 0x1b5   :  { %2615 = vmatprep.mubr.bf16.mxu1 %v4113_v44  ;;  %2542 = vmatprep.subr.bf16.mxu0 %v3731_v40  ;;  %v3747_v44 = vld [vmem:[#allocation8 + $0x468] ss:$16 sps:$4 sm:$0xff]   ;;  %v3818_v40 = vld [vmem:[#allocation8 + $0x70c] ss:$16 sps:$4 sm:$0xff]  }
 0x1b6   :  { %2585 = vmatprep.subr.bf16.mxu1 %v3734_v49  ;;  %v3813_v49 = vld [vmem:[#allocation8 + $0x508] ss:$16 sps:$4 sm:$0xff]  }
 0x1b7   :  { %2543 = vmatpush1.bf16.msra.mxu0 %v3729_v50  ;;  %v3816_v50 = vld [vmem:[#allocation8 + $0x708] ss:$16 sps:$4 sm:$0xff]  }
 0x1b8   :  { %2586 = vmatpush1.bf16.msra.mxu1 %v3732_v42  ;;  %2544 = vmatprep.subr.bf16.mxu0 %v3737_v51  ;;  %v3819_v42 = vld [vmem:[#allocation10 + $0x78] sm:$0xff]  }
 0x1b9   :  { %2587 = vmatprep.subr.bf16.mxu1 %v3740_v52  ;;  %v3820_v51 = vld [vmem:[#allocation10 + $0x38] sm:$0xff]   ;;  %v3821_v52 = vld [vmem:[#allocation10 + $0x70] sm:$0xff]  }
 0x1bb   :  { %2545 = vmatpush1.bf16.msra.mxu0 %v3735_v53  ;;  %v3822_v53 = vld [vmem:[#allocation10 + $0x30] sm:$0xff]  }
 0x1bc   :  { %2588 = vmatpush1.bf16.msra.mxu1 %v3738_v41  ;;  %2546 = vmatprep.subr.bf16.mxu0 %v3743_v54  ;;  %v3823_v41 = vld [vmem:[#allocation10 + $0x68] sm:$0xff]  }
 0x1bd   :  { %2589 = vmatprep.subr.bf16.mxu1 %v3746_v45  ;;  %v3824_v54 = vld [vmem:[#allocation10 + $0x28] sm:$0xff]   ;;  %v3825_v45 = vld [vmem:[#allocation10 + $0x60] sm:$0xff]  }
 0x1bf   :  { %2547 = vmatpush1.bf16.msra.mxu0 %v3741_v55  ;;  %v3826_v55 = vld [vmem:[#allocation10 + $0x20] sm:$0xff]  }
 0x1c0   :  { %2590 = vmatpush1.bf16.msra.mxu1 %v3744_v39  ;;  %2548 = vmatprep.subr.bf16.mxu0 %v3749_v56  ;;  %v3835_v39 = vld [vmem:[#allocation10 + $0xf8] sm:$0xff]  }
 0x1c1   :  { %2591 = vmatprep.subr.bf16.mxu1 %v3752_v57  ;;  %v3836_v56 = vld [vmem:[#allocation10 + $0xb8] sm:$0xff]   ;;  %v3837_v57 = vld [vmem:[#allocation10 + $0xf0] sm:$0xff]  }
 0x1c3   :  { %2549 = vmatpush1.bf16.msra.mxu0 %v3747_v44  ;;  %v3827_v44 = vld [vmem:[#allocation10 + $0x58] sm:$0xff]  }
 0x1c4   :  { %2592 = vmatpush1.bf16.msra.mxu1 %v3750_v58  ;;  %2550 = vmatprep.subr.bf16.mxu0 %v3755_v59  ;;  %v3839_v58 = vld [vmem:[#allocation10 + $0xe8] sm:$0xff]   ;;  %v3829_v59 = vld [vmem:[#allocation10 + $0x50] sm:$0xff]  }
 0x1c5   :  { %2593 = vmatprep.subr.bf16.mxu1 %v3758_v60  ;;  %v3840_v60 = vld [vmem:[#allocation10 + $0xa8] sm:$0xff]  }
 0x1c7   :  { %2551 = vmatpush1.bf16.msra.mxu0 %v3753_v61  ;;  %v3830_v61 = vld [vmem:[#allocation10 + $0x10] sm:$0xff]  }
 0x1c8   :  { %2594 = vmatpush1.bf16.msra.mxu1 %v3756_v62  ;;  %2552 = vmatprep.subr.bf16.mxu0 %v3761_v63  ;;  %v3841_v62 = vld [vmem:[#allocation10 + $0xe0] sm:$0xff]   ;;  %v3831_v63 = vld [vmem:[#allocation10 + $0x48] sm:$0xff]  }
 0x1c9   :  { %2595 = vmatprep.subr.bf16.mxu1 %v3764_v1  ;;  %v3842_v1 = vld [vmem:[#allocation10 + $0xa0] sm:$0xff]  }
 0x1cb   :  { %2553 = vmatpush1.bf16.msra.mxu0 %v3759_v2  ;;  %v3832_v2 = vld [vmem:[#allocation10 + $0x8] sm:$0xff]  }
 0x1cc   :  { %2596 = vmatpush1.bf16.msra.mxu1 %v3762_v3  ;;  %2554 = vmatprep.subr.bf16.mxu0 %v3767_v4  ;;  %v3833_v3 = vld [vmem:[#allocation10 + $0x40] sm:$0xff]  }
 0x1cd   :  { %2597 = vmatprep.subr.bf16.mxu1 %v3770_v5  ;;  %v3834_v4 = vld [vmem:[#allocation10] sm:$0xff]  }
 0x1cf   :  { %2555 = vmatpush1.bf16.msra.mxu0 %v3765_v14 }
 0x1d0   :  { %2598 = vmatpush1.bf16.msra.mxu1 %v3768_v15  ;;  %2556 = vmatprep.subr.bf16.mxu0 %v3773_v17  ;;  %v980_v17 = vld [vmem:[%s4163_s4] sm:$0xf] }
 0x1d1   :  { %2599 = vmatprep.subr.bf16.mxu1 %v3776_v18 }
 0x1d3   :  { %2557 = vmatpush2.bf16.msra.mxu0 %v3771_v19  ;;  %v989_v19 = vrot.slane %v980_v17, %v168_v8 }
 0x1d4   :  { %2600 = vmatpush2.bf16.msra.mxu1 %v3774_v20  ;;  %2558 = vmatprep.subr.bf16.mxu0 %v3779_v21  ;;  %v985_v20 = vrot.slane %v980_v17, %v164_v9 }
 0x1d5   :  { %2601 = vmatprep.subr.bf16.mxu1 %v3782_v6 }
 0x1d7   :  { %2559 = vmatpush2.bf16.msra.mxu0 %v3777_v23 }
 0x1d8   :  { %2602 = vmatpush2.bf16.msra.mxu1 %v3780_v24  ;;  %2560 = vmatprep.subr.bf16.mxu0 %v3785_v11 }
 0x1d9   :  { %2603 = vmatprep.subr.bf16.mxu1 %v3788_v26 }
 0x1db   :  { %2561 = vmatpush2.bf16.msra.mxu0 %v3783_v27 }
 0x1dc   :  { %2604 = vmatpush2.bf16.msra.mxu1 %v3786_v28  ;;  %2562 = vmatprep.subr.bf16.mxu0 %v3791_v13  ;;  %v3843_v13 = vld [vmem:[#allocation10 + $0xd8] sm:$0xff]  }
 0x1dd   :  { %2605 = vmatprep.subr.bf16.mxu1 %v3794_v29 }
 0x1df   :  { %2563 = vmatpush2.bf16.msra.mxu0 %v3789_v22 }
 0x1e0   :  { %2606 = vmatpush2.bf16.msra.mxu1 %v3792_v30  ;;  %2564 = vmatprep.subr.bf16.mxu0 %v3797_v31  ;;  %v3844_v31 = vld [vmem:[#allocation10 + $0x98] sm:$0xff]  }
 0x1e1   :  { %2607 = vmatprep.subr.bf16.mxu1 %v3800_v16 }
 0x1e3   :  { %2565 = vmatpush2.bf16.msra.mxu0 %v3795_v33 }
 0x1e4   :  { %2608 = vmatpush2.bf16.msra.mxu1 %v3798_v34  ;;  %2566 = vmatprep.subr.bf16.mxu0 %v3803_v35 }
 0x1e5   :  { %2609 = vmatprep.subr.bf16.mxu1 %v3806_v36 }
 0x1e7   :  { %2567 = vmatpush2.bf16.msra.mxu0 %v3801_v37  ;;  %v3845_v37 = vld [vmem:[#allocation10 + $0xd0] sm:$0xff]  }
 0x1e8   :  { %2610 = vmatpush2.bf16.msra.mxu1 %v3804_v38  ;;  %2568 = vmatprep.subr.bf16.mxu0 %v3809_v0 }
 0x1e9   :  { %2611 = vmatprep.subr.bf16.mxu1 %v3812_v43 }
 0x1eb   :  { %2569 = vmatpush2.bf16.msra.mxu0 %v3807_v46  ;;  %v3846_v46 = vld [vmem:[#allocation10 + $0x90] sm:$0xff]  }
 0x1ec   :  { %2612 = vmatpush2.bf16.msra.mxu1 %v3810_v47  ;;  %2570 = vmatprep.subr.bf16.mxu0 %v3815_v48 }
 0x1ed   :  { %2613 = vmatprep.subr.bf16.mxu1 %v3818_v40 }
 0x1ef   :  { %2571 = vmatpush2.bf16.msra.mxu0 %v3813_v49 }
 0x1f0   :  { %2614 = vmatpush2.bf16.msra.mxu1 %v3816_v50  ;;  %3377 = vmatprep.subr.bf16.mxu0 %v3819_v42 }
 0x1f1   :  { %3399 = vmatprep.subr.bf16.mxu1 %v3835_v39  ;;  %v3849_v39 = vld [vmem:[#allocation10 + $0xc0] sm:$0xff]  }
 0x1f2   :  { %2573 = vmatmul.mubr.bf16.vlgmr.msra.gmra.mxu0 %v4125_v32  ;;  %v3838_v32 = vld [vmem:[#allocation10 + $0xb0] sm:$0xff]   ;;  %v2316_v5 = vpop.f32.mrf.mxu0  ;;  %v2359_v14 = vpop.f32.mrf.mxu1 }
 0x1f3   :  { %2616 = vmatmul.mubr.bf16.vlgmr.msra.gmra.mxu1 %v4127_v25  ;;  %3378 = vmatpush3.bf16.msra.mxu0 %v3820_v51  ;;  %v3828_v25 = vld [vmem:[#allocation10 + $0x18] sm:$0xff]   ;;  %v2317_v24 = vadd.f32 %v2316_v5, %v985_v20  ;;  %v3847_v51 = vld [vmem:[#allocation10 + $0xc8] sm:$0xff]  }
 0x1f4   :  { %3379 = vmatprep.subr.bf16.mxu0 %v3821_v52  ;;  %3400 = vmatpush3.bf16.msra.mxu1 %v3836_v56  ;;  %v2318_v15 = vpop.f32.mrf.mxu0  ;;  %v2361_v18 = vpop.f32.mrf.mxu1 }
 0x1f5   :  { %3401 = vmatprep.subr.bf16.mxu1 %v3837_v57  ;;  %v2319_v23 = vadd.f32 %v2318_v15, %v989_v19  ;;  %v2360_v16 = vadd.f32 %v2359_v14, %v2317_v24  ;;  %v3850_v57 = vld [vmem:[#allocation10 + $0x80] sm:$0xff]  }
 0x1f6   :  { %v2320_v21 = vpop.f32.mrf.mxu0  ;;  %v2363_v6 = vpop.f32.mrf.mxu1 }
 0x1f7   :  { %3380 = vmatpush3.bf16.msra.mxu0 %v3822_v53  ;;  %v2321_v26 = vadd.f32 %v2320_v21, %v985_v20  ;;  %v2362_v29 = vadd.f32 %v2361_v18, %v2319_v23  ;;  %v3848_v53 = vld [vmem:[#allocation10 + $0x88] sm:$0xff]  }
 0x1f8   :  { %3381 = vmatprep.subr.bf16.mxu0 %v3823_v41  ;;  %3402 = vmatpush3.bf16.msra.mxu1 %v3838_v32  ;;  %v2322_v11 = vpop.f32.mrf.mxu0  ;;  %v2365_v27 = vpop.f32.mrf.mxu1 }
 0x1f9   :  { %3403 = vmatprep.subr.bf16.mxu1 %v3839_v58  ;;  %v2323_v22 = vadd.f32 %v2322_v11, %v989_v19  ;;  %v2364_v8 = vadd.f32 %v2363_v6, %v2321_v26 }
 0x1fb   :  { %3382 = vmatpush3.bf16.msra.mxu0 %v3824_v54  ;;  %v2366_v38 = vadd.f32 %v2365_v27, %v2323_v22 }
 0x1fc   :  { %3383 = vmatprep.subr.bf16.mxu0 %v3825_v45  ;;  %3404 = vmatpush3.bf16.msra.mxu1 %v3840_v60  ;;  %v997_v60 = vrot.slane %v980_v17, %v176_v10 }
 0x1fd   :  { %3405 = vmatprep.subr.bf16.mxu1 %v3841_v62 }
 0x1ff   :  { %3384 = vmatpush3.bf16.msra.mxu0 %v3826_v55 }
 0x200   :  { %3385 = vmatprep.subr.bf16.mxu0 %v3827_v44  ;;  %3406 = vmatpush3.bf16.msra.mxu1 %v3842_v1 }
 0x201   :  { %3407 = vmatprep.subr.bf16.mxu1 %v3843_v13 }
 0x203   :  { %3386 = vmatpush3.bf16.msra.mxu0 %v3828_v25 }
 0x204   :  { %3387 = vmatprep.subr.bf16.mxu0 %v3829_v59  ;;  %3408 = vmatpush3.bf16.msra.mxu1 %v3844_v31 }
 0x205   :  { %3409 = vmatprep.subr.bf16.mxu1 %v3845_v37 }
 0x207   :  { %3388 = vmatpush3.bf16.msra.mxu0 %v3830_v61  ;;  %v993_v61 = vrot.slane %v980_v17, %v172_v12 }
 0x208   :  { %3389 = vmatprep.subr.bf16.mxu0 %v3831_v63  ;;  %3410 = vmatpush3.bf16.msra.mxu1 %v3846_v46  ;;  %v3335_v46 = vld [vmem:[%s4165_s6] ss:$0 sm:$0xff]  ;;  %s3955_s6 = scalar_lea.vmem %s3001_s8, 128 }
 0x209   :  { %3411 = vmatprep.subr.bf16.mxu1 %v3847_v51  ;;  %p3956_p11 = scmp.ne.s32.totalorder %s3001_s8, %s3955_s6  ;;  %p3961_p13 = scmp.lt.s32.totalorder %s3955_s6, %s3955_s6 }
 0x20b   :  { %3390 = vmatpush3.bf16.msra.mxu0 %v3832_v2  ;;  %p3962_p0 = por %p3961_p13, %p3960_p12 }
 0x20c   :  { %3391 = vmatprep.subr.bf16.mxu0 %v3833_v3  ;;  %3412 = vmatpush3.bf16.msra.mxu1 %v3848_v53 }
 0x20d   :  { %3413 = vmatprep.subr.bf16.mxu1 %v3849_v39  ;;  %p3963_p1 = pnand %p3962_p0, %p3956_p11 }
 0x20f   :  { %3392 = vmatpush3.bf16.msra.mxu0 %v3834_v4 }
 0x210   :  { %3414 = vmatpush3.bf16.msra.mxu1 %v3850_v57 }
 0x232   :  { %v2402_v28 = vpop.f32.mrf.mxu0  ;;  %v2445_v30 = vpop.f32.mrf.mxu1 }
 0x233   :  { %v2403_v9 = vadd.f32 %v2402_v28, %v2360_v16 }
 0x234   :  { %v2404_v33 = vpop.f32.mrf.mxu0  ;;  %v2447_v35 = vpop.f32.mrf.mxu1 }
 0x235   :  { %v2405_v34 = vadd.f32 %v2404_v33, %v2362_v29  ;;  %v2446_v50 = vadd.f32 %v2445_v30, %v2403_v9 }
 0x236   :  { %v2406_v36 = vpop.f32.mrf.mxu0  ;;  %v2449_v43 = vpop.f32.mrf.mxu1 }
 0x237   :  { %v2407_v0 = vadd.f32 %v2406_v36, %v2364_v8  ;;  %v2448_v48 = vadd.f32 %v2447_v35, %v2405_v34  ;;  %v2626_v55 = vmax.f32 %v2446_v50, 0.0 }
 0x238   :  { %v2408_v47 = vpop.f32.mrf.mxu0  ;;  %v2451_v42 = vpop.f32.mrf.mxu1 }
 0x239   :  { %v2450_v40 = vadd.f32 %v2449_v43, %v2407_v0  ;;  %v2409_v49 = vadd.f32 %v2408_v47, %v2366_v38  ;;  %v2627_v54 = vmax.f32 %v2448_v48, 0.0 }
 0x23b   :  { %v2452_v52 = vadd.f32 %v2451_v42, %v2409_v49  ;;  %v2630_v41 = vmax.f32 %v2450_v40, 0.0 }
 0x23d   :  { %v2631_v45 = vmax.f32 %v2452_v52, 0.0  ;;  %v2634_v44 = vpack.c.bf16 %v2630_v41, %v2626_v55 }
 0x23f   :  { %v2635_v56 = vpack.c.bf16 %v2631_v45, %v2627_v54 }
 0x241   :  { %2933 = vmatprep.mubr.bf16.mxu0 %v2635_v56 }
 0x242   :  { %2934 = vmatmul.mubr.bf16.vlgmr.msra.gmra.mxu0 %v2634_v44 }
 0x272   :  { %v2488_v32 = vpop.f32.mrf.mxu0 }
 0x273   :  { %v2531_v25 = vpop.f32.mrf.mxu1  ;;  %v2489_v2 = vadd.f32 %v2488_v32, %v993_v61 }
 0x274   :  { %v2490_v58 = vpop.f32.mrf.mxu0 }
 0x275   :  { %v2533_v59 = vpop.f32.mrf.mxu1  ;;  %v2491_v1 = vadd.f32 %v2490_v58, %v997_v60  ;;  %v2532_v20 = vadd.f32 %v2531_v25, %v2489_v2 }
 0x276   :  { %v2492_v62 = vpop.f32.mrf.mxu0 }
 0x277   :  { %v2535_v63 = vpop.f32.mrf.mxu1  ;;  %v2493_v4 = vadd.f32 %v2492_v62, %v993_v61  ;;  %v2534_v15 = vadd.f32 %v2533_v59, %v2491_v1 }
 0x278   :  { %v2494_v3 = vpop.f32.mrf.mxu0 }
 0x279   :  { %v2537_v5 = vpop.f32.mrf.mxu1  ;;  %v2495_v18 = vadd.f32 %v2494_v3, %v997_v60  ;;  %v2536_v6 = vadd.f32 %v2535_v63, %v2493_v4 }
 0x27b   :  { %v2538_v7 = vadd.f32 %v2537_v5, %v2495_v18 }
 0x2b2   :  { %v2574_v14 = vpop.f32.mrf.mxu0 }
 0x2b3   :  { %v2617_v19 = vpop.f32.mrf.mxu1  ;;  %v2575_v10 = vadd.f32 %v2574_v14, %v2532_v20 }
 0x2b4   :  { %v2576_v21 = vpop.f32.mrf.mxu0 }
 0x2b5   :  { %v2577_v23 = vadd.f32 %v2576_v21, %v2534_v15  ;;  %v2619_v24 = vpop.f32.mrf.mxu1  ;;  %v2618_v29 = vadd.f32 %v2617_v19, %v2575_v10 }
 0x2b6   :  { %v2578_v11 = vpop.f32.mrf.mxu0 }
 0x2b7   :  { %v2579_v12 = vadd.f32 %v2578_v11, %v2536_v6  ;;  %v2621_v17 = vpop.f32.mrf.mxu1  ;;  %v2620_v27 = vadd.f32 %v2619_v24, %v2577_v23  ;;  %v2628_v8 = vmax.f32 %v2618_v29, 0.0 }
 0x2b8   :  { %v2580_v26 = vpop.f32.mrf.mxu0 }
 0x2b9   :  { %v2622_v28 = vadd.f32 %v2621_v17, %v2579_v12  ;;  %v2581_v13 = vadd.f32 %v2580_v26, %v2538_v7  ;;  %v2623_v22 = vpop.f32.mrf.mxu1  ;;  %v2629_v16 = vmax.f32 %v2620_v27, 0.0 }
 0x2bb   :  { %v2624_v30 = vadd.f32 %v2623_v22, %v2581_v13  ;;  %v2632_v31 = vmax.f32 %v2622_v28, 0.0 }
 0x2bd   :  { %v2633_v33 = vmax.f32 %v2624_v30, 0.0  ;;  %v2636_v35 = vpack.c.bf16 %v2632_v31, %v2628_v8 }
 0x2bf   :  { %v2637_v34 = vpack.c.bf16 %v2633_v33, %v2629_v16 }
 0x2c1   :  { %2974 = vmatprep.mubr.bf16.mxu1 %v2637_v34 }
 0x2c2   :  { %2975 = vmatmul.mubr.bf16.vlgmr.msra.gmra.mxu1 %v2636_v35 }
 0x302   :  { %v3393_v9 = vpop.f32.mrf.mxu0 }
 0x304   :  { %v3394_v36 = vpop.f32.mrf.mxu0 }
 0x305   :  { %v3395_v38 = vadd.f32 %v3394_v36, %v3393_v9 }
 0x306   :  { %v3396_v37 = vpop.f32.mrf.mxu0 }
 0x307   :  { %v2936_v49 = vadd.f32 %v3395_v38, %v3335_v46 }
 0x308   :  { %v3397_v0 = vpop.f32.mrf.mxu0 }
 0x309   :  { %v3398_v48 = vadd.f32 %v3397_v0, %v3396_v37 }
 0x30b   :  { %v2939_v52 = vadd.f32 %v3398_v48, %v3335_v46 }
 0x382   :  { %v3415_v43 = vpop.f32.mrf.mxu1 }
 0x384   :  { %v3416_v47 = vpop.f32.mrf.mxu1 }
 0x385   :  { %v3417_v40 = vadd.f32 %v3416_v47, %v3415_v43 }
 0x386   :  { %v3418_v50 = vpop.f32.mrf.mxu1 }
 0x387   :  { %v2977_v42 = vadd.f32 %v3417_v40, %v2936_v49 }
 0x388   :  { %v3419_v51 = vpop.f32.mrf.mxu1 }
 0x389   :  { %v3420_v53 = vadd.f32 %v3419_v51, %v3418_v50  ;;  %3851 = vtanh.f32 %v2977_v42 }
 0x38b   :  { %v2980_v41 = vadd.f32 %v3420_v53, %v2939_v52 }
 0x38d   :  { %3853 = vtanh.f32 %v2980_v41 }
 0x396   :  { %v3852_v54 = vpop.eup %3851 }
 0x39a   :  { %v3854_v45 = vpop.eup %3853 }
 0x39b   :  { %v3375_v55 = vpack.c.bf16 %v3854_v45, %v3852_v54 }
 0x39d   :  { %3376 = vst [vmem:[#allocation11] sm:$0xff] %v3375_v55  }
 0x39e   :  { %3966 = shalt.err (!%p3963_p1)
}
 0x39f   :  { %3006 = dma.vmem_to_hbm [thread:$0]  %s3001_s8, 128, %s4166_s7, [#allocation4], %s3990_s17, %s3990_s17, %s3991_s18  }
 0x3a0   :  { %3981 = dma.done.wait [#allocation4], 128  }
 0x3a1   :  { %3982 = vsyncadd [#allocation4], 4294967168 }
 0x3a2   :  { %3010 = vsyncpa [#allocation3], 1 }
 0x3a3   :  { %3011 = vsyncpa [#allocation6], 1 }
 0x3a4   :  { %3012 = vsyncpa [#allocation9], 1 }
 0x3a5   :  { %3013 = vsyncpa [#allocation4], 1 }

</bundles_post_ra>
